<compile_context>
chip_gen: v7x
topology: tpu7x:2x2x1
jax: 0.10.0
libtpu: 0.0.40
codegen_flags: <defaults>
</compile_context>

<pallas_src>
import functools

import jax
import jax.numpy as jnp
from jax.experimental import pallas as pl
from jax.experimental.pallas import tpu as pltpu

BN_EPS = 1e-5
MAX_TILE_N = 512                 # point-axis tile (multiple of 128 when tiled)
VMEM_LIMIT = 32 * 1024 * 1024    # safe on v5e/v6e/v7x; kernel needs far less


# ---------------------------------------------------------------------------
# Kernel 1: point MLP (conv1/2/3 with folded BN + ReLU) + running max over the
# point axis.  Grid = (B, num_point_tiles); B is "parallel" (megacore), the
# point-tile axis is "arbitrary" and accumulates into the revisited out block
# (stays VMEM-resident across the point axis; written back once per batch).
# ---------------------------------------------------------------------------
def point_mlp_kernel(x_ref,                   # (1, k, TN)  f32, channels-first
                     w1_ref, b1_ref,          # (k, 64)    bf16, (1, 64)   f32
                     w2_ref, b2_ref,          # (64, 128)  bf16, (1, 128)  f32
                     w3_ref, b3_ref,          # (128,1024) bf16, (1, 1024) f32
                     out_ref,                 # (1, 1, 1024) f32 (accumulator)
                     *, n_points, tile_n, needs_mask):
    n = pl.program_id(1)

    @pl.when(n == 0)
    def _():
        out_ref[...] = jnp.full(out_ref.shape, -jnp.inf, out_ref.dtype)

    x = x_ref[0].astype(jnp.bfloat16)                        # (k, TN)
    # conv1: contract over the channel axis k -> (TN, 64); the on-chip
    # operand transpose is handled by Mosaic (XLU slot, hidden under the
    # much larger conv3 MXU work), no HBM relayout needed.
    h = jax.lax.dot_general(x, w1_ref[...],
                            dimension_numbers=(((0,), (0,)), ((), ())),
                            preferred_element_type=jnp.float32)
    h = jnp.maximum(h + b1_ref[...], 0.0)
    h = jnp.dot(h.astype(jnp.bfloat16), w2_ref[...],
                preferred_element_type=jnp.float32)          # (TN, 128)
    h = jnp.maximum(h + b2_ref[...], 0.0)
    h = jnp.dot(h.astype(jnp.bfloat16), w3_ref[...],
                preferred_element_type=jnp.float32)          # (TN, 1024)
    h = jnp.maximum(h + b3_ref[...], 0.0)

    if needs_mask:
        # Ragged tail: points with global index >= N must not pollute the max.
        row = (jax.lax.broadcasted_iota(jnp.int32, (h.shape[0], 1), 0)
               + n * tile_n)
        h = jnp.where(row < n_points, h, -jnp.inf)

    tile_max = jnp.max(h, axis=0, keepdims=True)             # (1, 1024)
    out_ref[0] = jnp.maximum(out_ref[0], tile_max)


# ---------------------------------------------------------------------------
# Kernel 2: FC head (fc1/fc2 folded-BN + ReLU, fc3 with identity folded into
# its bias).  Runs once over the whole (small) batch; weight-DMA-bound, so the
# weights are bf16.
# ---------------------------------------------------------------------------
def head_kernel(x_ref,
                w4_ref, b4_ref,
                w5_ref, b5_ref,
                w6_ref, b6_ref,
                out_ref):
    x = x_ref[...].astype(jnp.bfloat16)                      # (B, 1024)
    h = jnp.dot(x, w4_ref[...], preferred_element_type=jnp.float32)
    h = jnp.maximum(h + b4_ref[...], 0.0)
    h = jnp.dot(h.astype(jnp.bfloat16), w5_ref[...],
                preferred_element_type=jnp.float32)
    h = jnp.maximum(h + b5_ref[...], 0.0)
    y = jnp.dot(h.astype(jnp.bfloat16), w6_ref[...],
                preferred_element_type=jnp.float32)
    out_ref[...] = y + b6_ref[...]      # b6 already contains bias + eye(k)


# ---------------------------------------------------------------------------
# Parameter construction (deterministic, in-script) and BN folding.
# ---------------------------------------------------------------------------
def init_params(key, k):
    def dense(key, cin, cout, scale=0.05):
        kw, kb = jax.random.split(key)
        w = jax.random.normal(kw, (cin, cout), jnp.float32) * scale  # W^T layout
        b = jax.random.normal(kb, (cout,), jnp.float32) * scale
        return w, b

    def bn(key, c):
        kg, kb, km, kv = jax.random.split(key, 4)
        gamma = 1.0 + 0.1 * jax.random.normal(kg, (c,), jnp.float32)
        beta = 0.1 * jax.random.normal(kb, (c,), jnp.float32)
        mean = 0.1 * jax.random.normal(km, (c,), jnp.float32)
        var = jax.random.uniform(kv, (c,), jnp.float32, 0.5, 1.5)
        return gamma, beta, mean, var

    keys = jax.random.split(key, 11)
    p = {}
    p["conv1"] = dense(keys[0], k, 64)
    p["bn1"] = bn(keys[1], 64)
    p["conv2"] = dense(keys[2], 64, 128)
    p["bn2"] = bn(keys[3], 128)
    p["conv3"] = dense(keys[4], 128, 1024)
    p["bn3"] = bn(keys[5], 1024)
    p["fc1"] = dense(keys[6], 1024, 512)
    p["bn4"] = bn(keys[7], 512)
    p["fc2"] = dense(keys[8], 512, 256)
    p["bn5"] = bn(keys[9], 256)
    p["fc3"] = dense(keys[10], 256, k * k)
    return p


def fold_bn_into_weight(w, layer_bias, bn_params):
    """Fold eval-mode BN scale into W and bias:  relu(x @ Wf + bf)."""
    gamma, beta, mean, var = bn_params
    scale = gamma / jnp.sqrt(var + BN_EPS)                  # (cout,)
    w_f = (w * scale[None, :]).astype(jnp.bfloat16)         # bf16 for the MXU
    b_f = ((layer_bias - mean) * scale + beta).reshape(1, -1)  # f32
    return w_f, b_f


def _point_tiling(n):
    if n <= MAX_TILE_N:
        return n, n                                          # single full tile
    n_pad = ((n + MAX_TILE_N - 1) // MAX_TILE_N) * MAX_TILE_N
    return MAX_TILE_N, n_pad


# ---------------------------------------------------------------------------
# Wrapper
# ---------------------------------------------------------------------------
@functools.partial(jax.jit, static_argnames=("k",))
def stnkd_forward(x_bkn, params, *, k):
    B, _, N = x_bkn.shape
    x = x_bkn.astype(jnp.float32)        # keep (B, k, N); no HBM transpose pass

    tile_n, n_pad = _point_tiling(N)
    if n_pad != N:
        x = jnp.pad(x, ((0, 0), (0, 0), (0, n_pad - N)))
    n_tiles = n_pad // tile_n

    w1, b1 = fold_bn_into_weight(*params["conv1"], params["bn1"])
    w2, b2 = fold_bn_into_weight(*params["conv2"], params["bn2"])
    w3, b3 = fold_bn_into_weight(*params["conv3"], params["bn3"])

    def rep(a):                          # replicated (non-tiled) operand
        return pl.BlockSpec(a.shape, lambda b, n: (0,) * a.ndim)

    kern = functools.partial(point_mlp_kernel, n_points=N, tile_n=tile_n,
                             needs_mask=(n_pad != N))
    pooled = pl.pallas_call(
        kern,
        out_shape=jax.ShapeDtypeStruct((B, 1, 1024), jnp.float32),
        grid=(B, n_tiles),
        in_specs=[
            pl.BlockSpec((1, k, tile_n), lambda b, n: (b, 0, n)),
            rep(w1), rep(b1), rep(w2), rep(b2), rep(w3), rep(b3),
        ],
        out_specs=pl.BlockSpec((1, 1, 1024), lambda b, n: (b, 0, 0)),
        compiler_params=pltpu.CompilerParams(
            dimension_semantics=("parallel", "arbitrary"),
            vmem_limit_bytes=VMEM_LIMIT),
    )(x, w1, b1, w2, b2, w3, b3)

    pooled = pooled.reshape(B, 1024)     # layout-free squeeze of the 1 axis

    w4, b4 = fold_bn_into_weight(*params["fc1"], params["bn4"])
    w5, b5 = fold_bn_into_weight(*params["fc2"], params["bn5"])
    w6, fb3 = params["fc3"]
    w6 = w6.astype(jnp.bfloat16)
    # Fold the identity matrix of the original module into the fc3 bias
    # (iden is identical for every batch row, so it broadcasts from (1, k*k)).
    b6 = (fb3 + jnp.eye(k, dtype=jnp.float32).reshape(-1)).reshape(1, -1)

    def full(a):
        return pl.BlockSpec(a.shape, lambda i: (0,) * a.ndim)

    out_flat = pl.pallas_call(
        head_kernel,
        out_shape=jax.ShapeDtypeStruct((B, k * k), jnp.float32),
        grid=(1,),
        in_specs=[full(pooled), full(w4), full(b4), full(w5), full(b5),
                  full(w6), full(b6)],
        out_specs=pl.BlockSpec((B, k * k), lambda i: (0, 0)),
        compiler_params=pltpu.CompilerParams(vmem_limit_bytes=VMEM_LIMIT),
    )(pooled, w4, b4, w5, b5, w6, b6)

    return out_flat.reshape(B, k, k)


if __name__ == "__main__":
    B, K, N = 2, 16, 32
    key = jax.random.PRNGKey(0)
    k_x, k_p = jax.random.split(key)
    x = jax.random.normal(k_x, (B, K, N), jnp.float32)   # PyTorch layout (B, k, N)
    params = init_params(k_p, K)

    out = stnkd_forward(x, params, k=K)
    jax.block_until_ready(out)
    assert out.shape == (B, K, K) and out.dtype == jnp.float32
    print("KERNEL_OK")
</pallas_src>

<mosaic_0001>
module attributes {stable_mosaic.version = 11 : i64} {
  func.func @point_mlp_kernel(%arg0: i32, %arg1: i32, %arg2: memref<1x16x32xf32, #tpu.memory_space<vmem>>, %arg3: memref<16x64xbf16, #tpu.memory_space<vmem>>, %arg4: memref<1x64xf32, #tpu.memory_space<vmem>>, %arg5: memref<64x128xbf16, #tpu.memory_space<vmem>>, %arg6: memref<1x128xf32, #tpu.memory_space<vmem>>, %arg7: memref<128x1024xbf16, #tpu.memory_space<vmem>>, %arg8: memref<1x1024xf32, #tpu.memory_space<vmem>>, %arg9: memref<1x1x1024xf32, #tpu.memory_space<vmem>>) attributes {dimension_semantics = [#tpu.dimension_semantics<parallel>, #tpu.dimension_semantics<arbitrary>], iteration_bounds = array<i64: 2, 1>, scalar_prefetch = 0 : i64, scratch_operands = 0 : i64, tpu.core_type = #tpu.core_type<tc>, window_params = [{transform_indices = @transform_0, window_bounds = array<i64: 1, 16, 32>}, {pipeline_mode = #tpu.pipeline_mode<synchronous>, transform_indices = @transform_1, window_bounds = array<i64: 16, 64>}, {pipeline_mode = #tpu.pipeline_mode<synchronous>, transform_indices = @transform_2, window_bounds = array<i64: 1, 64>}, {pipeline_mode = #tpu.pipeline_mode<synchronous>, transform_indices = @transform_3, window_bounds = array<i64: 64, 128>}, {pipeline_mode = #tpu.pipeline_mode<synchronous>, transform_indices = @transform_4, window_bounds = array<i64: 1, 128>}, {pipeline_mode = #tpu.pipeline_mode<synchronous>, transform_indices = @transform_5, window_bounds = array<i64: 128, 1024>}, {pipeline_mode = #tpu.pipeline_mode<synchronous>, transform_indices = @transform_6, window_bounds = array<i64: 1, 1024>}, {transform_indices = @transform_7, window_bounds = array<i64: 1, 1, 1024>}]} {
    %c0_i32 = arith.constant 0 : i32
    %0 = arith.cmpi eq, %arg1, %c0_i32 : i32
    %1 = arith.extui %0 : i1 to i32
    %c0_i32_0 = arith.constant 0 : i32
    %2 = arith.cmpi ne, %1, %c0_i32_0 : i32
    scf.if %2 {
      %cst_27 = arith.constant 0xFF800000 : f32
      %37 = vector.broadcast %cst_27 : f32 to vector<1x1x1024xf32>
      %c0_28 = arith.constant 0 : index
      %c0_29 = arith.constant 0 : index
      %c0_30 = arith.constant 0 : index
      %38 = vector.load %arg9[%c0_28, %c0_29, %c0_30] : memref<1x1x1024xf32, #tpu.memory_space<vmem>>, vector<1x1x1024xf32>
      tpu.vector_store %arg9[%c0_28, %c0_29, %c0_30], %37 {strides = array<i32>} : memref<1x1x1024xf32, #tpu.memory_space<vmem>>, vector<1x1x1024xf32>,
    } else {
    }
    %c0 = arith.constant 0 : index
    %c0_1 = arith.constant 0 : index
    %c0_2 = arith.constant 0 : index
    %3 = vector.load %arg2[%c0, %c0_1, %c0_2] : memref<1x16x32xf32, #tpu.memory_space<vmem>>, vector<1x16x32xf32>
    %4 = vector.shape_cast %3 : vector<1x16x32xf32> to vector<16x32xf32>
    %5 = arith.truncf %4 : vector<16x32xf32> to vector<16x32xbf16>
    %c0_3 = arith.constant 0 : index
    %c0_4 = arith.constant 0 : index
    %6 = vector.load %arg3[%c0_3, %c0_4] : memref<16x64xbf16, #tpu.memory_space<vmem>>, vector<16x64xbf16>
    %cst = arith.constant dense<0.000000e+00> : vector<32x64xf32>
    %7 = tpu.matmul %5, %6, %cst {dimension_numbers = #tpu.dot_dimension_numbers<[0], [0], [1], [1], [0, 1, 1, 1], [], []>} : vector<16x32xbf16>, vector<16x64xbf16>, vector<32x64xf32> -> vector<32x64xf32>
    %c0_5 = arith.constant 0 : index
    %c0_6 = arith.constant 0 : index
    %8 = vector.load %arg4[%c0_5, %c0_6] : memref<1x64xf32, #tpu.memory_space<vmem>>, vector<1x64xf32>
    %9 = vector.broadcast %8 : vector<1x64xf32> to vector<32x64xf32>
    %10 = arith.addf %7, %9 : vector<32x64xf32>
    %cst_7 = arith.constant 0.000000e+00 : f32
    %11 = vector.broadcast %cst_7 : f32 to vector<32x64xf32>
    %12 = arith.maximumf %10, %11 : vector<32x64xf32>
    %13 = arith.truncf %12 : vector<32x64xf32> to vector<32x64xbf16>
    %c0_8 = arith.constant 0 : index
    %c0_9 = arith.constant 0 : index
    %14 = vector.load %arg5[%c0_8, %c0_9] : memref<64x128xbf16, #tpu.memory_space<vmem>>, vector<64x128xbf16>
    %cst_10 = arith.constant dense<0.000000e+00> : vector<32x128xf32>
    %15 = tpu.matmul %13, %14, %cst_10 {dimension_numbers = #tpu.dot_dimension_numbers<[1], [0], [0], [1], [0, 0, 1, 1], [], []>} : vector<32x64xbf16>, vector<64x128xbf16>, vector<32x128xf32> -> vector<32x128xf32>
    %c0_11 = arith.constant 0 : index
    %c0_12 = arith.constant 0 : index
    %16 = vector.load %arg6[%c0_11, %c0_12] : memref<1x128xf32, #tpu.memory_space<vmem>>, vector<1x128xf32>
    %17 = vector.broadcast %16 : vector<1x128xf32> to vector<32x128xf32>
    %18 = arith.addf %15, %17 : vector<32x128xf32>
    %cst_13 = arith.constant 0.000000e+00 : f32
    %19 = vector.broadcast %cst_13 : f32 to vector<32x128xf32>
    %20 = arith.maximumf %18, %19 : vector<32x128xf32>
    %21 = arith.truncf %20 : vector<32x128xf32> to vector<32x128xbf16>
    %c0_14 = arith.constant 0 : index
    %c0_15 = arith.constant 0 : index
    %22 = vector.load %arg7[%c0_14, %c0_15] : memref<128x1024xbf16, #tpu.memory_space<vmem>>, vector<128x1024xbf16>
    %cst_16 = arith.constant dense<0.000000e+00> : vector<32x1024xf32>
    %23 = tpu.matmul %21, %22, %cst_16 {dimension_numbers = #tpu.dot_dimension_numbers<[1], [0], [0], [1], [0, 0, 1, 1], [], []>} : vector<32x128xbf16>, vector<128x1024xbf16>, vector<32x1024xf32> -> vector<32x1024xf32>
    %c0_17 = arith.constant 0 : index
    %c0_18 = arith.constant 0 : index
    %24 = vector.load %arg8[%c0_17, %c0_18] : memref<1x1024xf32, #tpu.memory_space<vmem>>, vector<1x1024xf32>
    %25 = vector.broadcast %24 : vector<1x1024xf32> to vector<32x1024xf32>
    %26 = arith.addf %23, %25 : vector<32x1024xf32>
    %cst_19 = arith.constant 0.000000e+00 : f32
    %27 = vector.broadcast %cst_19 : f32 to vector<32x1024xf32>
    %28 = arith.maximumf %26, %27 : vector<32x1024xf32>
    %cst_20 = arith.constant dense<0xFF800000> : vector<1024xf32>
    %29 = vector.multi_reduction <maximumf>, %28, %cst_20 [0] : vector<32x1024xf32> to vector<1024xf32>
    %30 = vector.shape_cast %29 : vector<1024xf32> to vector<1x1024xf32>
    %c0_21 = arith.constant 0 : index
    %c0_22 = arith.constant 0 : index
    %c0_23 = arith.constant 0 : index
    %31 = vector.load %arg9[%c0_21, %c0_22, %c0_23] : memref<1x1x1024xf32, #tpu.memory_space<vmem>>, vector<1x1x1024xf32>
    %32 = vector.shape_cast %31 : vector<1x1x1024xf32> to vector<1x1024xf32>
    %33 = arith.maximumf %32, %30 : vector<1x1024xf32>
    %c0_24 = arith.constant 0 : index
    %c0_25 = arith.constant 0 : index
    %c0_26 = arith.constant 0 : index
    %34 = vector.load %arg9[%c0_24, %c0_25, %c0_26] : memref<1x1x1024xf32, #tpu.memory_space<vmem>>, vector<1x1x1024xf32>
    %35 = vector.shape_cast %34 : vector<1x1x1024xf32> to vector<1x1024xf32>
    %36 = vector.shape_cast %33 : vector<1x1024xf32> to vector<1x1x1024xf32>
    tpu.vector_store %arg9[%c0_24, %c0_25, %c0_26], %36 {strides = array<i32>} : memref<1x1x1024xf32, #tpu.memory_space<vmem>>, vector<1x1x1024xf32>,
    return
  }
  func.func @transform_0(%arg0: i32, %arg1: i32) -> (i32, i32, i32) {
    %c0_i32 = arith.constant 0 : i32
    %c0_i32_0 = arith.constant 0 : i32
    return %arg0, %c0_i32, %arg1 : i32, i32, i32
  }
  func.func @transform_1(%arg0: i32, %arg1: i32) -> (i32, i32) {
    %c0_i32 = arith.constant 0 : i32
    %c0_i32_0 = arith.constant 0 : i32
    %c0_i32_1 = arith.constant 0 : i32
    return %c0_i32, %c0_i32_0 : i32, i32
  }
  func.func @transform_2(%arg0: i32, %arg1: i32) -> (i32, i32) {
    %c0_i32 = arith.constant 0 : i32
    %c0_i32_0 = arith.constant 0 : i32
    %c0_i32_1 = arith.constant 0 : i32
    return %c0_i32, %c0_i32_0 : i32, i32
  }
  func.func @transform_3(%arg0: i32, %arg1: i32) -> (i32, i32) {
    %c0_i32 = arith.constant 0 : i32
    %c0_i32_0 = arith.constant 0 : i32
    %c0_i32_1 = arith.constant 0 : i32
    return %c0_i32, %c0_i32_0 : i32, i32
  }
  func.func @transform_4(%arg0: i32, %arg1: i32) -> (i32, i32) {
    %c0_i32 = arith.constant 0 : i32
    %c0_i32_0 = arith.constant 0 : i32
    %c0_i32_1 = arith.constant 0 : i32
    return %c0_i32, %c0_i32_0 : i32, i32
  }
  func.func @transform_5(%arg0: i32, %arg1: i32) -> (i32, i32) {
    %c0_i32 = arith.constant 0 : i32
    %c0_i32_0 = arith.constant 0 : i32
    %c0_i32_1 = arith.constant 0 : i32
    return %c0_i32, %c0_i32_0 : i32, i32
  }
  func.func @transform_6(%arg0: i32, %arg1: i32) -> (i32, i32) {
    %c0_i32 = arith.constant 0 : i32
    %c0_i32_0 = arith.constant 0 : i32
    %c0_i32_1 = arith.constant 0 : i32
    return %c0_i32, %c0_i32_0 : i32, i32
  }
  func.func @transform_7(%arg0: i32, %arg1: i32) -> (i32, i32, i32) {
    %c0_i32 = arith.constant 0 : i32
    %c0_i32_0 = arith.constant 0 : i32
    %c0_i32_1 = arith.constant 0 : i32
    return %arg0, %c0_i32, %c0_i32_0 : i32, i32, i32
  }
}

module attributes {stable_mosaic.version = 11 : i64} {
  func.func @head_kernel(%arg0: i32, %arg1: memref<2x1024xf32, #tpu.memory_space<vmem>>, %arg2: memref<1024x512xbf16, #tpu.memory_space<vmem>>, %arg3: memref<1x512xf32, #tpu.memory_space<vmem>>, %arg4: memref<512x256xbf16, #tpu.memory_space<vmem>>, %arg5: memref<1x256xf32, #tpu.memory_space<vmem>>, %arg6: memref<256x256xbf16, #tpu.memory_space<vmem>>, %arg7: memref<1x256xf32, #tpu.memory_space<vmem>>, %arg8: memref<2x256xf32, #tpu.memory_space<vmem>>) attributes {dimension_semantics = [#tpu.dimension_semantics<arbitrary>], iteration_bounds = array<i64: 1>, scalar_prefetch = 0 : i64, scratch_operands = 0 : i64, tpu.core_type = #tpu.core_type<tc>, window_params = [{pipeline_mode = #tpu.pipeline_mode<synchronous>, transform_indices = @transform_0, window_bounds = array<i64: 2, 1024>}, {pipeline_mode = #tpu.pipeline_mode<synchronous>, transform_indices = @transform_1, window_bounds = array<i64: 1024, 512>}, {pipeline_mode = #tpu.pipeline_mode<synchronous>, transform_indices = @transform_2, window_bounds = array<i64: 1, 512>}, {pipeline_mode = #tpu.pipeline_mode<synchronous>, transform_indices = @transform_3, window_bounds = array<i64: 512, 256>}, {pipeline_mode = #tpu.pipeline_mode<synchronous>, transform_indices = @transform_4, window_bounds = array<i64: 1, 256>}, {pipeline_mode = #tpu.pipeline_mode<synchronous>, transform_indices = @transform_5, window_bounds = array<i64: 256, 256>}, {pipeline_mode = #tpu.pipeline_mode<synchronous>, transform_indices = @transform_6, window_bounds = array<i64: 1, 256>}, {pipeline_mode = #tpu.pipeline_mode<synchronous>, transform_indices = @transform_7, window_bounds = array<i64: 2, 256>}]} {
    %c0 = arith.constant 0 : index
    %c0_0 = arith.constant 0 : index
    %0 = vector.load %arg1[%c0, %c0_0] : memref<2x1024xf32, #tpu.memory_space<vmem>>, vector<2x1024xf32>
    %1 = arith.truncf %0 : vector<2x1024xf32> to vector<2x1024xbf16>
    %c0_1 = arith.constant 0 : index
    %c0_2 = arith.constant 0 : index
    %2 = vector.load %arg2[%c0_1, %c0_2] : memref<1024x512xbf16, #tpu.memory_space<vmem>>, vector<1024x512xbf16>
    %cst = arith.constant dense<0.000000e+00> : vector<2x512xf32>
    %3 = tpu.matmul %1, %2, %cst {dimension_numbers = #tpu.dot_dimension_numbers<[1], [0], [0], [1], [0, 0, 1, 1], [], []>} : vector<2x1024xbf16>, vector<1024x512xbf16>, vector<2x512xf32> -> vector<2x512xf32>
    %c0_3 = arith.constant 0 : index
    %c0_4 = arith.constant 0 : index
    %4 = vector.load %arg3[%c0_3, %c0_4] : memref<1x512xf32, #tpu.memory_space<vmem>>, vector<1x512xf32>
    %5 = vector.broadcast %4 : vector<1x512xf32> to vector<2x512xf32>
    %6 = arith.addf %3, %5 : vector<2x512xf32>
    %cst_5 = arith.constant 0.000000e+00 : f32
    %7 = vector.broadcast %cst_5 : f32 to vector<2x512xf32>
    %8 = arith.maximumf %6, %7 : vector<2x512xf32>
    %9 = arith.truncf %8 : vector<2x512xf32> to vector<2x512xbf16>
    %c0_6 = arith.constant 0 : index
    %c0_7 = arith.constant 0 : index
    %10 = vector.load %arg4[%c0_6, %c0_7] : memref<512x256xbf16, #tpu.memory_space<vmem>>, vector<512x256xbf16>
    %cst_8 = arith.constant dense<0.000000e+00> : vector<2x256xf32>
    %11 = tpu.matmul %9, %10, %cst_8 {dimension_numbers = #tpu.dot_dimension_numbers<[1], [0], [0], [1], [0, 0, 1, 1], [], []>} : vector<2x512xbf16>, vector<512x256xbf16>, vector<2x256xf32> -> vector<2x256xf32>
    %c0_9 = arith.constant 0 : index
    %c0_10 = arith.constant 0 : index
    %12 = vector.load %arg5[%c0_9, %c0_10] : memref<1x256xf32, #tpu.memory_space<vmem>>, vector<1x256xf32>
    %13 = vector.broadcast %12 : vector<1x256xf32> to vector<2x256xf32>
    %14 = arith.addf %11, %13 : vector<2x256xf32>
    %cst_11 = arith.constant 0.000000e+00 : f32
    %15 = vector.broadcast %cst_11 : f32 to vector<2x256xf32>
    %16 = arith.maximumf %14, %15 : vector<2x256xf32>
    %17 = arith.truncf %16 : vector<2x256xf32> to vector<2x256xbf16>
    %c0_12 = arith.constant 0 : index
    %c0_13 = arith.constant 0 : index
    %18 = vector.load %arg6[%c0_12, %c0_13] : memref<256x256xbf16, #tpu.memory_space<vmem>>, vector<256x256xbf16>
    %cst_14 = arith.constant dense<0.000000e+00> : vector<2x256xf32>
    %19 = tpu.matmul %17, %18, %cst_14 {dimension_numbers = #tpu.dot_dimension_numbers<[1], [0], [0], [1], [0, 0, 1, 1], [], []>} : vector<2x256xbf16>, vector<256x256xbf16>, vector<2x256xf32> -> vector<2x256xf32>
    %c0_15 = arith.constant 0 : index
    %c0_16 = arith.constant 0 : index
    %20 = vector.load %arg7[%c0_15, %c0_16] : memref<1x256xf32, #tpu.memory_space<vmem>>, vector<1x256xf32>
    %21 = vector.broadcast %20 : vector<1x256xf32> to vector<2x256xf32>
    %22 = arith.addf %19, %21 : vector<2x256xf32>
    %c0_17 = arith.constant 0 : index
    %c0_18 = arith.constant 0 : index
    %23 = vector.load %arg8[%c0_17, %c0_18] : memref<2x256xf32, #tpu.memory_space<vmem>>, vector<2x256xf32>
    tpu.vector_store %arg8[%c0_17, %c0_18], %22 {strides = array<i32>} : memref<2x256xf32, #tpu.memory_space<vmem>>, vector<2x256xf32>,
    return
  }
  func.func @transform_0(%arg0: i32) -> (i32, i32) {
    %c0_i32 = arith.constant 0 : i32
    %c0_i32_0 = arith.constant 0 : i32
    %c0_i32_1 = arith.constant 0 : i32
    return %c0_i32, %c0_i32_0 : i32, i32
  }
  func.func @transform_1(%arg0: i32) -> (i32, i32) {
    %c0_i32 = arith.constant 0 : i32
    %c0_i32_0 = arith.constant 0 : i32
    %c0_i32_1 = arith.constant 0 : i32
    return %c0_i32, %c0_i32_0 : i32, i32
  }
  func.func @transform_2(%arg0: i32) -> (i32, i32) {
    %c0_i32 = arith.constant 0 : i32
    %c0_i32_0 = arith.constant 0 : i32
    %c0_i32_1 = arith.constant 0 : i32
    return %c0_i32, %c0_i32_0 : i32, i32
  }
  func.func @transform_3(%arg0: i32) -> (i32, i32) {
    %c0_i32 = arith.constant 0 : i32
    %c0_i32_0 = arith.constant 0 : i32
    %c0_i32_1 = arith.constant 0 : i32
    return %c0_i32, %c0_i32_0 : i32, i32
  }
  func.func @transform_4(%arg0: i32) -> (i32, i32) {
    %c0_i32 = arith.constant 0 : i32
    %c0_i32_0 = arith.constant 0 : i32
    %c0_i32_1 = arith.constant 0 : i32
    return %c0_i32, %c0_i32_0 : i32, i32
  }
  func.func @transform_5(%arg0: i32) -> (i32, i32) {
    %c0_i32 = arith.constant 0 : i32
    %c0_i32_0 = arith.constant 0 : i32
    %c0_i32_1 = arith.constant 0 : i32
    return %c0_i32, %c0_i32_0 : i32, i32
  }
  func.func @transform_6(%arg0: i32) -> (i32, i32) {
    %c0_i32 = arith.constant 0 : i32
    %c0_i32_0 = arith.constant 0 : i32
    %c0_i32_1 = arith.constant 0 : i32
    return %c0_i32, %c0_i32_0 : i32, i32
  }
  func.func @transform_7(%arg0: i32) -> (i32, i32) {
    %c0_i32 = arith.constant 0 : i32
    %c0_i32_0 = arith.constant 0 : i32
    %c0_i32_1 = arith.constant 0 : i32
    return %c0_i32, %c0_i32_0 : i32, i32
  }
}

</mosaic_0001>

<bundles_post_ra>
// kernel: stnkd_forward.2
= control target key start
LH: loop header
LB: loop body
LE: loop exit
PB: predicated region body
PF: predicated region fallthrough
CT: control target
= control target key end

     0   :  { %12 = vsyncpa [#allocation3], 0  ;;  %s2098_s0 = inlined_call_operand.hbm [shape: f32[2,16,32], index: 0, kind: input, shape index: {}]   ;;  %s2099_s1 = inlined_call_operand.vmem [shape: bf16[16,64], index: 1, kind: input, shape index: {}]   ;;  %s2100_s2 = inlined_call_operand.vmem [shape: f32[1,64], index: 2, kind: input, shape index: {}]   ;;  %s2101_s3 = inlined_call_operand.vmem [shape: bf16[64,128], index: 3, kind: input, shape index: {}]   ;;  %s2102_s4 = inlined_call_operand.vmem [shape: f32[1,128], index: 4, kind: input, shape index: {}]   ;;  %s2103_s5 = inlined_call_operand.vmem [shape: bf16[128,1024], index: 5, kind: input, shape index: {}]   ;;  %s2104_s6 = inlined_call_operand.vmem [shape: f32[1,1024], index: 6, kind: input, shape index: {}]   ;;  %s2105_s7 = inlined_call_operand.vmem [shape: f32[2,1,1024], index: 7, kind: output, shape index: {}]  }
   0x1   :  { %14 = vsyncpa [#allocation3 + $0x1], 0  ;;  %s1700_s24 = smov 0   ;;  %s1702_s25 = smov 0  }
   0x2   :  { %s1704_s26 = smov 0   ;;  %s1706_s27 = smov 0  }
   0x3   :  { %s1708_s28 = smov 0   ;;  %s1710_s29 = smov 0  }
   0x4 LB: > { %s1393_s30 = sadd.s32 4294967295, %s1653_s29   ;;  %s32_s8 = sadd.s32 1, %s1649_s28  ;;  %s1653_s29 = sphi %s1710_s29, %s20_s29   ;;  %s1649_s28 = sphi %s1708_s28, %s2113_s28   ;;  %s1645_s27 = sphi %s1706_s27, %s2112_s27   ;;  %s1641_s26 = sphi %s1704_s26, %s2111_s26   ;;  %s1637_s25 = sphi %s1702_s25, %s2110_s25   ;;  %s1633_s24 = sphi %s1700_s24, %s2109_s24  }
   0x5   : > { %p34_p0 = scmp.ge.s32.totalorder %s32_s8, 2  ;;  %s41_s9 = sadd.s32 1, %s1641_s26 }
   0x6   : > { %p48_p1 = scmp.ne.s32.totalorder %s1641_s26, %s1637_s25  ;;  %p49_p2 = scmp.eq.s32.totalorder %s1653_s29, 0 }
   0x7   : > { %s2115_s8 = smov (%p34_p0, %s32_s8), 0  ;;  %p54_p4 = scmp.ne.s32.totalorder %s1637_s25, %s1633_s24 }
   0x8   : > { %p1736_p3 = por %p49_p2, %p48_p1  ;;  %s36_s11 = ssub.s32 %s1649_s28, %s2115_s8 }
   0x9   : > { %p55_p5 = scmp.eq.s32.totalorder %s1393_s30, 0  ;;  %p39_p6 = scmp.eq.s32.totalorder %s36_s11, 0 }
   0xa   : > { %p1514_p8 = scmp.lt.s32.totalorder %s1653_s29, 2  ;;  %s248_s14 = sand.u32 1, %s1641_s26  }
   0xb   : > { %p1743_p7 = por %p55_p5, %p54_p4  ;;  %s1480_s15 = sshll.u32 %s1649_s28, 8 }
   0xc   : > { %s1749_s13 = scalar_select %p39_p6, %s1641_s26, %s41_s9  }
   0xd   : > { %s1397_s16 = sshll.u32 %s248_s14, 4  ;;  %s1756_s19 = scalar_lea.hbm %s2098_s0, %s1480_s15 }
   0xe   : > { %s252_s20 = scalar_lea.vmem [#allocation2], %s1397_s16  ;;  %p1760_p9 = pnand %p1514_p8, %p1736_p3 }
   0xf   : > { %s260_s21 = sshll.u32 %s252_s20, 4  ;;  %s1766_s23 = scalar_lea.sflag [#allocation3], %s248_s14  ;;  %s1764_s21 = int_to_ptr.vmem [resolvable:$true] %s260_s21 }
  0x10   : > { %s1573_s24 = scalar_lea.hbm %s1756_s19, 256  ;;  %p1575_p11 = pneg %p1760_p9 }
  0x11   : > { %p1574_p10 = scmp.ne.s32.totalorder %s1756_s19, %s1573_s24  ;;  %s1578_s10 = scalar_lea.hbm %s2098_s0, 512 }
  0x12   : > { %p1579_p0 = scmp.lt.u32.totalorder %s1756_s19, %s2098_s0  ;;  %p1580_p1 = scmp.lt.u32.totalorder %s1578_s10, %s1573_s24 }
  0x13   : > { %p1576_p12 = pnand %p1575_p11, %p1574_p10  ;;  %p1582_p3 = scmp.lt.u32.totalorder %s1573_s24, %s1756_s19 }
  0x14   : > { %p1581_p2 = por %p1580_p1, %p1579_p0 }
  0x15   : > { %p1577_p13 = pneg %p1576_p12 }
  0x16   : > { %p1583_p4 = por %p1582_p3, %p1581_p2 }
  0x18   : > { %p1584_p5 = pnand %p1583_p4, %p1577_p13 }
  0x1a   : > { %1587 = shalt.err (!%p1584_p5)
}
  0x1b   : > { %s1588_s14 = scalar_lea.vmem %s1764_s21, 256  ;;  %s1655_s16 = smov [#allocation2]  }
  0x1c   : > { %p1589_p6 = scmp.ne.s32.totalorder %s1764_s21, %s1588_s14  ;;  %s1593_s17 = sshll.u32 %s1655_s16, 4  ;;  %s1594_s17 = int_to_ptr.vmem [resolvable:$false] %s1593_s17 }
  0x1d   : > { %s1595_s18 = scalar_lea.vmem %s1594_s17, 512  ;;  %p1596_p12 = scmp.lt.s32.totalorder %s1764_s21, %s1594_s17 }
  0x1e   : > { %p1591_p8 = pnand %p1589_p6, %p1575_p11  ;;  %p1597_p0 = scmp.lt.s32.totalorder %s1595_s18, %s1588_s14 }
  0x20   : > { %p1592_p10 = pneg %p1591_p8  ;;  %p1598_p1 = por %p1597_p0, %p1596_p12 }
  0x22   : > { %p1599_p2 = pnand %p1598_p1, %p1592_p10 }
  0x24   : > { %1602 = shalt.err (!%p1599_p2)
}
  0x25   : > { %s1656_s20 = smov 128   ;;  %s1657_s24 = smov 8  }
  0x26   : > { %1513 = dma.hbm_to_vmem [thread:$0]  (!%p1760_p9), %s1756_s19, 256, %s1764_s21, %s1766_s23, %s1656_s20, %s1656_s20, %s1657_s24  }
  0x27   : > { %p1400_p11 = scmp.ge.s32.totalorder %s1653_s29, 1  ;;  %p268_p13 = scmp.lt.s32.totalorder %s1653_s29, 3 }
  0x29   : > { %p269_p3 = pnand %p1400_p11, %p268_p13 }
  0x2a   : > { %s274_s30 = sand.u32 (!%p269_p3), 1, %s1637_s25  }
  0x2b   : > { %272 = sbr.rel (%p269_p3) target bundleno = 888 (0x378), region = 48  ;;  %s1401_s9 = sshll.u32 (!%p269_p3), %s274_s30, 4 }
  0x2c   : > { %s275_s10 = scalar_lea.sflag (!%p269_p3), [#allocation3], %s274_s30  ;;  %s278_s11 = scalar_lea.vmem (!%p269_p3), [#allocation2], %s1401_s9 }
  0x32   : > { %1628 = dma.done.wait (%p1743_p7), %s275_s10, 256  }
  0x33   : > { %1630 = vsyncadd (%p1743_p7), %s275_s10, 4294967040  ;;  %v318_v0 = vld [vmem:[%s278_s11] sm:$0xff]  ;;  %v319_v1 = vld [vmem:[%s278_s11 + $0x8] sm:$0xff]  ;;  %vm352_vm0 = vcmask 130048   ;;  %vm453_vm1 = vcmask 523264   ;;  %p308_p7 = scmp.lt.s32.totalorder %s1645_s27, 1 }
  0x34   : > { %v320_v2 = vpack.c.bf16 %v319_v1, %v318_v0  ;;  %v1568_v3 = vld [vmem:[%s2099_s1] sm:$0xff]   ;;  %v1570_v5 = vld [vmem:[%s2101_s3 + $0x8] sm:$0xff]   ;;  %v1571_v8 = vld [vmem:[%s2101_s3 + $0x10] sm:$0xff]  }
  0x35   : > { %v1569_v4 = vld [vmem:[%s2101_s3] sm:$0xff]   ;;  %1490 = vmatprep.subr.bf16.mxu0 %v1568_v3  ;;  %v1572_v9 = vld [vmem:[%s2101_s3 + $0x18] sm:$0xff]   ;;  %v516_v12 = vld [vmem:[%s2103_s5 + $0x8] sm:$0xff]  ;;  %s2117_s27 = smov (!%p308_p7, %s1645_s27), 1 }
  0x36   : > { %330 = vxpose.xlu0.c.b16.start.end [1/1] (short) (narrow) %v320_v2, 32  ;;  %1491 = vmatpush3.bf16.msra.mxu0 %v1568_v3  ;;  %v515_v10 = vld [vmem:[%s2103_s5] sm:$0xff]  ;;  %v520_v15 = vld [vmem:[%s2103_s5 + $0x28] sm:$0xff]  ;;  %s1402_s22 = sshll.u32 %s2117_s27, 3 }
  0x37   : > { %1496 = vmatprep.subr.bf16.mxu1 %v1569_v4  ;;  %v519_v11 = vld [vmem:[%s2103_s5 + $0x20] sm:$0xff]  ;;  %v1416_v18 = vcombine.low %v516_v12, %v520_v15  ;;  %v1417_v19 = vcombine.high %v516_v12, %v520_v15  ;;  %v524_v51 = vld [vmem:[%s2103_s5 + $0x48] sm:$0xff]  ;;  %s311_s23 = scalar_lea.vmem %s2105_s7, %s1402_s22 }
  0x38   : > { %1497 = vmatpush3.bf16.msra.mxu1 %v1569_v4  ;;  %v1414_v13 = vcombine.low %v515_v10, %v519_v11  ;;  %v1415_v14 = vcombine.high %v515_v10, %v519_v11  ;;  %v523_v16 = vld [vmem:[%s2103_s5 + $0x40] sm:$0xff]  ;;  %v528_v52 = vld [vmem:[%s2103_s5 + $0x68] sm:$0xff] }
  0x39   : > { %1498 = vmatprep.subr.bf16.mxu1 %v1570_v5  ;;  %v527_v17 = vld [vmem:[%s2103_s5 + $0x60] sm:$0xff]  ;;  %v1425_v55 = vcombine.high %v524_v51, %v528_v52  ;;  %v532_v56 = vld [vmem:[%s2103_s5 + $0x88] sm:$0xff]  ;;  %v1424_v58 = vcombine.low %v524_v51, %v528_v52 }
  0x3a   : > { %v1423_v20 = vcombine.high %v523_v16, %v527_v17  ;;  %941 = vmatprep.subr.bf16.mxu0 %v1415_v14  ;;  %v1422_v21 = vcombine.low %v523_v16, %v527_v17  ;;  %v531_v22 = vld [vmem:[%s2103_s5 + $0x80] sm:$0xff]  ;;  %v536_v57 = vld [vmem:[%s2103_s5 + $0xa8] sm:$0xff] }
  0x3b   : > { %v535_v23 = vld [vmem:[%s2103_s5 + $0xa0] sm:$0xff]  ;;  %v1433_v59 = vcombine.high %v532_v56, %v536_v57  ;;  %v540_v60 = vld [vmem:[%s2103_s5 + $0xc8] sm:$0xff]  ;;  %v1432_v62 = vcombine.low %v532_v56, %v536_v57  ;;  %v537_v56 = vld [vmem:[%s2103_s5 + $0xb0] sm:$0xff] }
  0x3c   : > { %1499 = vmatpush3.bf16.msra.mxu1 %v1570_v5  ;;  %v1431_v24 = vcombine.high %v531_v22, %v535_v23  ;;  %v1430_v25 = vcombine.low %v531_v22, %v535_v23  ;;  %v539_v26 = vld [vmem:[%s2103_s5 + $0xc0] sm:$0xff]  ;;  %v544_v61 = vld [vmem:[%s2103_s5 + $0xe8] sm:$0xff]  ;;  %v534_v57 = vld [vmem:[%s2103_s5 + $0x98] sm:$0xff] }
  0x3d   : > { %1500 = vmatprep.subr.bf16.mxu1 %v1571_v8  ;;  %v543_v27 = vld [vmem:[%s2103_s5 + $0xe0] sm:$0xff]  ;;  %v1441_v63 = vcombine.high %v540_v60, %v544_v61  ;;  %v548_v0 = vld [vmem:[%s2103_s5 + $0x108] sm:$0xff]  ;;  %v1440_v2 = vcombine.low %v540_v60, %v544_v61 }
  0x3e   : > { %v1439_v28 = vcombine.high %v539_v26, %v543_v27  ;;  %v1438_v29 = vcombine.low %v539_v26, %v543_v27  ;;  %v547_v30 = vld [vmem:[%s2103_s5 + $0x100] sm:$0xff]  ;;  %v552_v1 = vld [vmem:[%s2103_s5 + $0x128] sm:$0xff]  ;;  %v521_v26 = vld [vmem:[%s2103_s5 + $0x30] sm:$0xff] }
  0x3f   : > { %v551_v31 = vld [vmem:[%s2103_s5 + $0x120] sm:$0xff]  ;;  %v1449_v3 = vcombine.high %v548_v0, %v552_v1  ;;  %v556_v4 = vld [vmem:[%s2103_s5 + $0x148] sm:$0xff]  ;;  %v518_v27 = vld [vmem:[%s2103_s5 + $0x18] sm:$0xff] }
  0x40   : > { %1501 = vmatpush3.bf16.msra.mxu1 %v1571_v8  ;;  %v1447_v32 = vcombine.high %v547_v30, %v551_v31  ;;  %v1446_v33 = vcombine.low %v547_v30, %v551_v31  ;;  %v555_v34 = vld [vmem:[%s2103_s5 + $0x140] sm:$0xff]  ;;  %v560_v5 = vld [vmem:[%s2103_s5 + $0x168] sm:$0xff] }
  0x41   : > { %1502 = vmatprep.subr.bf16.mxu1 %v1572_v9  ;;  %v559_v35 = vld [vmem:[%s2103_s5 + $0x160] sm:$0xff]  ;;  %v1456_v8 = vcombine.low %v556_v4, %v560_v5  ;;  %v564_v11 = vld [vmem:[%s2103_s5 + $0x188] sm:$0xff] }
  0x42   : > { %v1455_v36 = vcombine.high %v555_v34, %v559_v35  ;;  %v1454_v37 = vcombine.low %v555_v34, %v559_v35  ;;  %v1403_v38 = vld [vmem:[%s2100_s2] ss:$0 sm:$0xff] }
  0x43   : > { %v567_v10 = vld [vmem:[%s2103_s5 + $0x1a0] sm:$0xff] }
  0x44   : > { %1503 = vmatpush3.bf16.msra.mxu1 %v1572_v9  ;;  %v563_v9 = vld [vmem:[%s2103_s5 + $0x180] sm:$0xff] }
  0x45   : > { %994 = vmatprep.subr.bf16.mxu1 %v1417_v19  ;;  %v1463_v12 = vcombine.high %v563_v9, %v567_v10  ;;  %v1462_v14 = vcombine.low %v563_v9, %v567_v10  ;;  %v571_v17 = vld [vmem:[%s2103_s5 + $0x1c0] sm:$0xff]  ;;  %v572_v19 = vld [vmem:[%s2103_s5 + $0x1c8] sm:$0xff]  ;;  %v550_v9 = vld [vmem:[%s2103_s5 + $0x118] sm:$0xff] }
  0x46   : > { %v1407_v34 = vld [vmem:[%s2102_s4] ss:$0 sm:$0xff]  ;;  %v554_v10 = vld [vmem:[%s2103_s5 + $0x138] sm:$0xff] }
  0x9c   : > { %v338_v6 = vpop.trf.xlu0 }
  0x9d   : > { %1492 = vmatprep.mubr.msk.bf16.mxu0 %vm352_vm0, %v338_v6  ;;  %v1448_v6 = vcombine.low %v548_v0, %v552_v1  ;;  %v545_v0 = vld [vmem:[%s2103_s5 + $0xf0] sm:$0xff]  ;;  %v542_v1 = vld [vmem:[%s2103_s5 + $0xd8] sm:$0xff] }
  0xa0   : > { %v339_v7 = vpop.trf.xlu0 }
  0xa1   : > { %1493 = vmatmul.mubr.msk.bf16.vlgmr.msra.gmra.mrb[0].mxu0 %vm352_vm0, %v339_v7  ;;  %v1457_v7 = vcombine.high %v556_v4, %v560_v5 }
  0xa2   : > { %942 = vmatpush1.bf16.msra.mxu0 %v1414_v13  ;;  %v568_v13 = vld [vmem:[%s2103_s5 + $0x1a8] sm:$0xff] }
  0xa3   : > { %943 = vmatprep.subr.bf16.mxu0 %v1423_v20  ;;  %v1464_v15 = vcombine.low %v564_v11, %v568_v13  ;;  %v1465_v16 = vcombine.high %v564_v11, %v568_v13 }
  0xa6   : > { %944 = vmatpush1.bf16.msra.mxu0 %v1422_v21  ;;  %v576_v21 = vld [vmem:[%s2103_s5 + $0x1e8] sm:$0xff] }
  0xa7   : > { %945 = vmatprep.subr.bf16.mxu0 %v1431_v24  ;;  %v1472_v23 = vcombine.low %v572_v19, %v576_v21  ;;  %v1473_v24 = vcombine.high %v572_v19, %v576_v21 }
  0xaa   : > { %946 = vmatpush1.bf16.msra.mxu0 %v1430_v25  ;;  %v517_v25 = vld [vmem:[%s2103_s5 + $0x10] sm:$0xff] }
  0xab   : > { %947 = vmatprep.subr.bf16.mxu0 %v1439_v28  ;;  %v1419_v28 = vcombine.high %v517_v25, %v521_v26  ;;  %v1418_v30 = vcombine.low %v517_v25, %v521_v26  ;;  %v566_v25 = vld [vmem:[%s2103_s5 + $0x198] sm:$0xff] }
  0xac   : > { %v570_v26 = vld [vmem:[%s2103_s5 + $0x1b8] sm:$0xff] }
  0xae   : > { %948 = vmatpush1.bf16.msra.mxu0 %v1438_v29  ;;  %v522_v29 = vld [vmem:[%s2103_s5 + $0x38] sm:$0xff] }
  0xaf   : > { %949 = vmatprep.subr.bf16.mxu0 %v1447_v32  ;;  %v1420_v31 = vcombine.low %v518_v27, %v522_v29  ;;  %v1421_v32 = vcombine.high %v518_v27, %v522_v29 }
  0xb2   : > { %950 = vmatpush1.bf16.msra.mxu0 %v1446_v33  ;;  %v1658_v33 = vmov 0  }
  0xb3   : > { %951 = vmatprep.subr.bf16.mxu0 %v1455_v36  ;;  %973 = vmatprep.mubr.bf16.mxu0 %v1658_v33 }
  0xb6   : > { %952 = vmatpush1.bf16.msra.mxu0 %v1454_v37 }
  0xb7   : > { %953 = vmatprep.subr.bf16.mxu0 %v1463_v12 }
  0xba   : > { %954 = vmatpush1.bf16.msra.mxu0 %v1462_v14  ;;  %v1453_v14 = vcombine.high %v550_v9, %v554_v10 }
 0x174   : > { %v1494_v39 = vpop.f32.mrb[0].mxu0 }
 0x175   : > { %v402_v40 = vadd.f32 %v1494_v39, %v1403_v38  ;;  %v393_v41 = vpop.f32.mrb[1].mxu0 }
 0x176   : > { %v394_v42 = vadd.f32 %v1403_v38, %v393_v41  ;;  %v1495_v43 = vpop.f32.mrb[2].mxu0 }
 0x177   : > { %v405_v44 = vadd.f32 %v1495_v43, %v1403_v38  ;;  %v396_v45 = vpop.f32.mrb[3].mxu0  ;;  %v410_v47 = vmax.f32 %v402_v40, 0.0  ;;  %v525_v43 = vld [vmem:[%s2103_s5 + $0x50] sm:$0xff] }
 0x178   : > { %v397_v46 = vadd.f32 %v1403_v38, %v396_v45  ;;  %v408_v49 = vmax.f32 %v394_v42, 0.0 }
 0x179   : > { %v411_v48 = vmax.f32 %v405_v44, 0.0 }
 0x17a   : > { %v409_v50 = vmax.f32 %v397_v46, 0.0  ;;  %v529_v46 = vld [vmem:[%s2103_s5 + $0x70] sm:$0xff] }
 0x17b   : > { %v413_v53 = vpack.c.bf16 %v411_v48, %v410_v47  ;;  %v526_v47 = vld [vmem:[%s2103_s5 + $0x58] sm:$0xff] }
 0x17c   : > { %v412_v54 = vpack.c.bf16 %v409_v50, %v408_v49  ;;  %v530_v48 = vld [vmem:[%s2103_s5 + $0x78] sm:$0xff] }
 0x17d   : > { %v1428_v60 = vcombine.low %v526_v47, %v530_v48 }
 0x17e   : > { %1504 = vmatprep.mubr.msk.bf16.mxu1 %vm453_vm1, %v412_v54  ;;  %v1429_v54 = vcombine.high %v526_v47, %v530_v48 }
 0x17f   : > { %1505 = vmatmul.mubr.msk.bf16.vlgmr.msra.gmra.mrb[0].mxu1 %vm453_vm1, %v413_v53  ;;  %v1427_v53 = vcombine.high %v525_v43, %v529_v46 }
 0x180   : > { %995 = vmatpush1.bf16.msra.mxu1 %v1416_v18  ;;  %v575_v18 = vld [vmem:[%s2103_s5 + $0x1e0] sm:$0xff]  ;;  %1026 = vmatprep.mubr.bf16.mxu1 %v1658_v33 }
 0x181   : > { %996 = vmatprep.subr.bf16.mxu1 %v1425_v55  ;;  %v1471_v20 = vcombine.high %v571_v17, %v575_v18  ;;  %v1470_v22 = vcombine.low %v571_v17, %v575_v18  ;;  %v533_v55 = vld [vmem:[%s2103_s5 + $0x90] sm:$0xff]  ;;  %v558_v17 = vld [vmem:[%s2103_s5 + $0x158] sm:$0xff] }
 0x182   : > { %v1435_v61 = vcombine.high %v533_v55, %v537_v56  ;;  %v562_v18 = vld [vmem:[%s2103_s5 + $0x178] sm:$0xff] }
 0x183   : > { %955 = vmatprep.subr.bf16.mxu0 %v1471_v20  ;;  %v1452_v20 = vcombine.low %v550_v9, %v554_v10 }
 0x184   : > { %997 = vmatpush1.bf16.msra.mxu1 %v1424_v58  ;;  %956 = vmatpush1.bf16.msra.mxu0 %v1470_v22  ;;  %v538_v58 = vld [vmem:[%s2103_s5 + $0xb8] sm:$0xff]  ;;  %v1461_v22 = vcombine.high %v558_v17, %v562_v18 }
 0x185   : > { %998 = vmatprep.subr.bf16.mxu1 %v1433_v59  ;;  %1047 = vmatprep.subr.bf16.mxu0 %v1419_v28  ;;  %v1426_v59 = vcombine.low %v525_v43, %v529_v46  ;;  %v1436_v4 = vcombine.low %v534_v57, %v538_v58  ;;  %v1460_v28 = vcombine.low %v558_v17, %v562_v18  ;;  %v2041_v46 = vld [vmem:[%s2104_s6] sm:$0xff] }
 0x188   : > { %999 = vmatpush1.bf16.msra.mxu1 %v1432_v62  ;;  %v1437_v62 = vcombine.high %v534_v57, %v538_v58 }
 0x189   : > { %1000 = vmatprep.subr.bf16.mxu1 %v1441_v63  ;;  %v541_v63 = vld [vmem:[%s2103_s5 + $0xd0] sm:$0xff] }
 0x18a   : > { %v1443_v5 = vcombine.high %v541_v63, %v545_v0  ;;  %v1442_v11 = vcombine.low %v541_v63, %v545_v0 }
 0x18c   : > { %1001 = vmatpush1.bf16.msra.mxu1 %v1440_v2  ;;  %v546_v2 = vld [vmem:[%s2103_s5 + $0xf8] sm:$0xff] }
 0x18d   : > { %1002 = vmatprep.subr.bf16.mxu1 %v1449_v3  ;;  %v1434_v3 = vcombine.low %v533_v55, %v537_v56  ;;  %v1444_v12 = vcombine.low %v542_v1, %v546_v2 }
 0x190   : > { %1003 = vmatpush1.bf16.msra.mxu1 %v1448_v6  ;;  %v1445_v6 = vcombine.high %v542_v1, %v546_v2 }
 0x191   : > { %1004 = vmatprep.subr.bf16.mxu1 %v1457_v7  ;;  %v549_v7 = vld [vmem:[%s2103_s5 + $0x110] sm:$0xff] }
 0x194   : > { %1005 = vmatpush1.bf16.msra.mxu1 %v1456_v8  ;;  %v553_v8 = vld [vmem:[%s2103_s5 + $0x130] sm:$0xff] }
 0x195   : > { %1006 = vmatprep.subr.bf16.mxu1 %v1465_v16  ;;  %v1451_v13 = vcombine.high %v549_v7, %v553_v8  ;;  %v561_v16 = vld [vmem:[%s2103_s5 + $0x170] sm:$0xff]  ;;  %v1450_v19 = vcombine.low %v549_v7, %v553_v8 }
 0x198   : > { %1007 = vmatpush1.bf16.msra.mxu1 %v1464_v15  ;;  %v557_v15 = vld [vmem:[%s2103_s5 + $0x150] sm:$0xff] }
 0x199   : > { %1008 = vmatprep.subr.bf16.mxu1 %v1473_v24  ;;  %v1459_v21 = vcombine.high %v557_v15, %v561_v16  ;;  %v569_v24 = vld [vmem:[%s2103_s5 + $0x1b0] sm:$0xff]  ;;  %v1458_v27 = vcombine.low %v557_v15, %v561_v16 }
 0x19c   : > { %1009 = vmatpush1.bf16.msra.mxu1 %v1472_v23  ;;  %v565_v23 = vld [vmem:[%s2103_s5 + $0x190] sm:$0xff] }
 0x19d   : > { %1100 = vmatprep.subr.bf16.mxu1 %v1421_v32  ;;  %v1467_v29 = vcombine.high %v565_v23, %v569_v24  ;;  %v577_v32 = vld [vmem:[%s2103_s5 + $0x1f0] sm:$0xff] }
 0x252   : > { %v1506_v35 = vpop.f32.mrb[0].mxu1 }
 0x253   : > { %v503_v36 = vadd.f32 %v1506_v35, %v1407_v34  ;;  %v494_v37 = vpop.f32.mrb[1].mxu1  ;;  %v578_v35 = vld [vmem:[%s2103_s5 + $0x1f8] sm:$0xff] }
 0x254   : > { %v495_v38 = vadd.f32 %v1407_v34, %v494_v37  ;;  %v1507_v39 = vpop.f32.mrb[2].mxu1  ;;  %v1468_v37 = vcombine.low %v566_v25, %v570_v26 }
 0x255   : > { %v506_v40 = vadd.f32 %v1507_v39, %v1407_v34  ;;  %v497_v41 = vpop.f32.mrb[3].mxu1  ;;  %v511_v44 = vmax.f32 %v503_v36, 0.0  ;;  %v1466_v36 = vcombine.low %v565_v23, %v569_v24 }
 0x256   : > { %v498_v42 = vadd.f32 %v1407_v34, %v497_v41  ;;  %v509_v49 = vmax.f32 %v495_v38, 0.0  ;;  %v574_v34 = vld [vmem:[%s2103_s5 + $0x1d8] sm:$0xff] }
 0x257   : > { %v512_v45 = vmax.f32 %v506_v40, 0.0  ;;  %v1477_v39 = vcombine.high %v574_v34, %v578_v35  ;;  %v1476_v41 = vcombine.low %v574_v34, %v578_v35 }
 0x258   : > { %v510_v50 = vmax.f32 %v498_v42, 0.0  ;;  %v581_v42 = vlaneseq }
 0x259   : > { %v1944_v51 = vpack.c.bf16 %v512_v45, %v511_v44 }
 0x25a   : > { %v1946_v52 = vpack.c.bf16 %v510_v50, %v509_v49  ;;  %v2034_v43 = vshrl.u32 %v581_v42, 7 }
 0x25c   : > { %974 = vmatmul.mubr.bf16.vlgmr.msra.gmra.mrb[4].mxu0 %v1946_v52  ;;  %1027 = vmatmul.mubr.bf16.vlgmr.msra.gmra.mrb[4].mxu1 %v1946_v52  ;;  %v583_v44 = vsub.s32 0, %v2034_v43  ;;  %v591_v45 = vsub.s32 2, %v2034_v43  ;;  %v587_v47 = vsub.s32 1, %v2034_v43 }
 0x25d   : > { %1048 = vmatpush1.bf16.msra.mxu0 %v1418_v30  ;;  %1101 = vmatpush1.bf16.msra.mxu1 %v1420_v31  ;;  %v1469_v30 = vcombine.high %v566_v25, %v570_v26  ;;  %v573_v31 = vld [vmem:[%s2103_s5 + $0x1d0] sm:$0xff] }
 0x25e   : > { %1049 = vmatprep.subr.bf16.mxu0 %v1427_v53  ;;  %1102 = vmatprep.subr.bf16.mxu1 %v1429_v54  ;;  %v1475_v38 = vcombine.high %v573_v31, %v577_v32  ;;  %v1474_v40 = vcombine.low %v573_v31, %v577_v32  ;;  %v584_v48 = vrot.slane %v2041_v46, %v583_v44 }
 0x25f   : > { %983 = vmatprep.mubr.bf16.mxu0 %v1658_v33  ;;  %1036 = vmatprep.mubr.bf16.mxu1 %v1658_v33  ;;  %v592_v49 = vrot.slane %v2041_v46, %v591_v45  ;;  %v588_v50 = vrot.slane %v2041_v46, %v587_v47 }
 0x261   : > { %1050 = vmatpush1.bf16.msra.mxu0 %v1426_v59  ;;  %1103 = vmatpush1.bf16.msra.mxu1 %v1428_v60 }
 0x262   : > { %1051 = vmatprep.subr.bf16.mxu0 %v1435_v61  ;;  %1104 = vmatprep.subr.bf16.mxu1 %v1437_v62 }
 0x264   : > { %984 = vmatmul.mubr.bf16.gmra.mrb[8].mxu0 %v1944_v51  ;;  %1037 = vmatmul.mubr.bf16.gmra.mrb[8].mxu1 %v1944_v51 }
 0x265   : > { %1052 = vmatpush1.bf16.msra.mxu0 %v1434_v3  ;;  %1105 = vmatpush1.bf16.msra.mxu1 %v1436_v4 }
 0x266   : > { %1053 = vmatprep.subr.bf16.mxu0 %v1443_v5  ;;  %1106 = vmatprep.subr.bf16.mxu1 %v1445_v6 }
 0x267   : > { %1079 = vmatprep.mubr.bf16.mxu0 %v1658_v33  ;;  %1132 = vmatprep.mubr.bf16.mxu1 %v1658_v33 }
 0x269   : > { %1054 = vmatpush1.bf16.msra.mxu0 %v1442_v11  ;;  %1107 = vmatpush1.bf16.msra.mxu1 %v1444_v12 }
 0x26a   : > { %1055 = vmatprep.subr.bf16.mxu0 %v1451_v13  ;;  %1108 = vmatprep.subr.bf16.mxu1 %v1453_v14 }
 0x26d   : > { %1056 = vmatpush1.bf16.msra.mxu0 %v1450_v19  ;;  %1109 = vmatpush1.bf16.msra.mxu1 %v1452_v20 }
 0x26e   : > { %1057 = vmatprep.subr.bf16.mxu0 %v1459_v21  ;;  %1110 = vmatprep.subr.bf16.mxu1 %v1461_v22 }
 0x271   : > { %1058 = vmatpush1.bf16.msra.mxu0 %v1458_v27  ;;  %1111 = vmatpush1.bf16.msra.mxu1 %v1460_v28 }
 0x272   : > { %1059 = vmatprep.subr.bf16.mxu0 %v1467_v29  ;;  %1112 = vmatprep.subr.bf16.mxu1 %v1469_v30 }
 0x275   : > { %1060 = vmatpush1.bf16.msra.mxu0 %v1466_v36  ;;  %1113 = vmatpush1.bf16.msra.mxu1 %v1468_v37 }
 0x276   : > { %1061 = vmatprep.subr.bf16.mxu0 %v1475_v38  ;;  %1114 = vmatprep.subr.bf16.mxu1 %v1477_v39 }
 0x279   : > { %1062 = vmatpush1.bf16.msra.mxu0 %v1474_v40  ;;  %1115 = vmatpush1.bf16.msra.mxu1 %v1476_v41 }
 0x27c   : > { %1080 = vmatmul.mubr.bf16.vlgmr.msra.gmra.mrb[12].mxu0 %v1946_v52  ;;  %1133 = vmatmul.mubr.bf16.vlgmr.msra.gmra.mrb[12].mxu1 %v1946_v52 }
 0x27d   : > { %1089 = vmatprep.mubr.bf16.mxu0 %v1658_v33  ;;  %1142 = vmatprep.mubr.bf16.mxu1 %v1658_v33  ;;  %v595_v33 = vsub.s32 3, %v2034_v43 }
 0x284   : > { %1090 = vmatmul.mubr.bf16.gmra.mrb[16].mxu0 %v1944_v51  ;;  %1143 = vmatmul.mubr.bf16.gmra.mrb[16].mxu1 %v1944_v51  ;;  %v596_v51 = vrot.slane %v2041_v46, %v595_v33 }
 0x32f   : > { %v975_v52 = vpop.f32.mrb[4].mxu0  ;;  %v1028_v53 = vpop.f32.mrb[4].mxu1 }
 0x330   : > { %v976_v54 = vadd.f32 %v975_v52, %v584_v48  ;;  %v1029_v55 = vadd.f32 %v1028_v53, %v592_v49  ;;  %v977_v56 = vpop.f32.mrb[5].mxu0  ;;  %v1030_v57 = vpop.f32.mrb[5].mxu1 }
 0x331   : > { %v978_v58 = vadd.f32 %v977_v56, %v588_v50  ;;  %v1031_v59 = vadd.f32 %v1030_v57, %v596_v51  ;;  %v979_v60 = vpop.f32.mrb[6].mxu0  ;;  %v1032_v61 = vpop.f32.mrb[6].mxu1 }
 0x332   : > { %v980_v62 = vadd.f32 %v979_v60, %v584_v48  ;;  %v1033_v63 = vadd.f32 %v1032_v61, %v592_v49  ;;  %v981_v0 = vpop.f32.mrb[7].mxu0  ;;  %v1034_v1 = vpop.f32.mrb[7].mxu1  ;;  %v1153_v4 = vmax.f32 %v976_v54, 0.0  ;;  %v1155_v5 = vmax.f32 %v1029_v55, 0.0 }
 0x333   : > { %v982_v2 = vadd.f32 %v981_v0, %v588_v50  ;;  %v1035_v3 = vadd.f32 %v1034_v1, %v596_v51  ;;  %v1154_v8 = vmax.f32 %v978_v58, 0.0  ;;  %v1156_v9 = vmax.f32 %v1031_v59, 0.0 }
 0x334   : > { %v1161_v6 = vmax.f32 %v980_v62, 0.0  ;;  %v1163_v7 = vmax.f32 %v1033_v63, 0.0 }
 0x335   : > { %v1162_v10 = vmax.f32 %v982_v2, 0.0  ;;  %v1164_v11 = vmax.f32 %v1035_v3, 0.0 }
 0x336   : > { %v1185_v12 = vmax.f32 %v1153_v4, %v1161_v6  ;;  %v1203_v13 = vmax.f32 %v1155_v5, %v1163_v7  ;;  %v599_v7 = vsub.s32 4, %v2034_v43 }
 0x337   : > { %v1194_v14 = vmax.f32 %v1154_v8, %v1162_v10  ;;  %v1212_v15 = vmax.f32 %v1156_v9, %v1164_v11  ;;  %v985_v16 = vpop.f32.mrb[8].mxu0  ;;  %v1038_v17 = vpop.f32.mrb[8].mxu1  ;;  %v607_v8 = vsub.s32 6, %v2034_v43  ;;  %v603_v11 = vsub.s32 5, %v2034_v43 }
 0x338   : > { %v986_v18 = vadd.f32 %v985_v16, %v584_v48  ;;  %v1039_v19 = vadd.f32 %v1038_v17, %v592_v49  ;;  %v987_v20 = vpop.f32.mrb[9].mxu0  ;;  %v1040_v21 = vpop.f32.mrb[9].mxu1 }
 0x339   : > { %v988_v22 = vadd.f32 %v987_v20, %v588_v50  ;;  %v1041_v23 = vadd.f32 %v1040_v21, %v596_v51  ;;  %v989_v24 = vpop.f32.mrb[10].mxu0  ;;  %v1042_v25 = vpop.f32.mrb[10].mxu1 }
 0x33a   : > { %v1169_v26 = vmax.f32 %v986_v18, 0.0  ;;  %v1171_v27 = vmax.f32 %v1039_v19, 0.0  ;;  %v990_v28 = vadd.f32 %v989_v24, %v584_v48  ;;  %v1043_v29 = vadd.f32 %v1042_v25, %v592_v49  ;;  %v991_v30 = vpop.f32.mrb[11].mxu0  ;;  %v1044_v31 = vpop.f32.mrb[11].mxu1 }
 0x33b   : > { %v1170_v32 = vmax.f32 %v988_v22, 0.0  ;;  %v1172_v34 = vmax.f32 %v1041_v23, 0.0  ;;  %v992_v35 = vadd.f32 %v991_v30, %v588_v50  ;;  %v1045_v36 = vadd.f32 %v1044_v31, %v596_v51 }
 0x33c   : > { %v1186_v37 = vmax.f32 %v1185_v12, %v1169_v26  ;;  %v1204_v38 = vmax.f32 %v1203_v13, %v1171_v27  ;;  %v1177_v39 = vmax.f32 %v990_v28, 0.0  ;;  %v1179_v40 = vmax.f32 %v1043_v29, 0.0 }
 0x33d   : > { %v1195_v41 = vmax.f32 %v1194_v14, %v1170_v32  ;;  %v1213_v42 = vmax.f32 %v1212_v15, %v1172_v34  ;;  %v1178_v44 = vmax.f32 %v992_v35, 0.0  ;;  %v1180_v45 = vmax.f32 %v1045_v36, 0.0 }
 0x33e   : > { %v1187_v47 = vmax.f32 %v1186_v37, %v1177_v39  ;;  %v1205_v33 = vmax.f32 %v1204_v38, %v1179_v40  ;;  %v1659_v51 = vmov 1966171168   ;;  %v611_v14 = vsub.s32 7, %v2034_v43 }
 0x33f   : > { %v1196_v52 = vmax.f32 %v1195_v41, %v1178_v44  ;;  %v1214_v53 = vmax.f32 %v1213_v42, %v1180_v45  ;;  %v1271_v58 = vunpack.c.l.s4 %v1659_v51  ;;  %v600_v18 = vrot.slane %v2041_v46, %v599_v7 }
 0x340   : > { %v1188_v48 = vrot.slane %v1187_v47, 4  ;;  %v1206_v49 = vrot.slane %v1205_v33, 4  ;;  %v608_v19 = vrot.slane %v2041_v46, %v607_v8  ;;  %v604_v22 = vrot.slane %v2041_v46, %v603_v11 }
 0x341   : > { %v1197_v54 = vrot.slane %v1196_v52, 4  ;;  %v1215_v55 = vrot.slane %v1214_v53, 4  ;;  %v1272_v3 = vunpack.c.0.s8 %v1271_v58  ;;  %v612_v23 = vrot.slane %v2041_v46, %v611_v14 }
 0x342   : > { %v1189_v56 = vmax.f32 %v1187_v47, %v1188_v48  ;;  %v1207_v57 = vmax.f32 %v1205_v33, %v1206_v49 }
 0x343   : > { %v1198_v50 = vmax.f32 %v1196_v52, %v1197_v54  ;;  %v1216_v59 = vmax.f32 %v1214_v53, %v1215_v55  ;;  %v2054_v16 = vsub.s32 %v1272_v3, %v2034_v43 }
 0x344   : > { %v1190_v60 = vrot.slane %v1189_v56, 2  ;;  %v1208_v61 = vrot.slane %v1207_v57, 2 }
 0x345   : > { %v1199_v62 = vrot.slane %v1198_v50, 2  ;;  %v1217_v63 = vrot.slane %v1216_v59, 2 }
 0x346   : > { %v1191_v0 = vmax.f32 %v1189_v56, %v1190_v60  ;;  %v1209_v1 = vmax.f32 %v1207_v57, %v1208_v61 }
 0x347   : > { %v1200_v2 = vmax.f32 %v1198_v50, %v1199_v62  ;;  %v1218_v4 = vmax.f32 %v1216_v59, %v1217_v63 }
 0x348   : > { %v1192_v5 = vrot.slane %v1191_v0, 1  ;;  %v1210_v6 = vrot.slane %v1209_v1, 1 }
 0x349   : > { %v1201_v9 = vrot.slane %v1200_v2, 1  ;;  %v1219_v10 = vrot.slane %v1218_v4, 1 }
 0x34a   : > { %v1193_v12 = vmax.f32 %v1191_v0, %v1192_v5  ;;  %v1211_v13 = vmax.f32 %v1209_v1, %v1210_v6 }
 0x34b   : > { %v1202_v15 = vmax.f32 %v1200_v2, %v1201_v9  ;;  %v1220_v17 = vmax.f32 %v1218_v4, %v1219_v10 }
 0x34d   : > { %v1266_v20 = vcombine.low %v1193_v12, %v1202_v15  ;;  %v1267_v21 = vcombine.low %v1211_v13, %v1220_v17 }
 0x34f   : > { %v2061_v24 = vrot.slane %v1266_v20, %v2054_v16  ;;  %v2064_v25 = vrot.slane %v1267_v21, %v2054_v16  ;;  %v1081_v26 = vpop.f32.mrb[12].mxu0  ;;  %v1134_v43 = vpop.f32.mrb[12].mxu1 }
 0x350   : > { %v1082_v27 = vadd.f32 %v1081_v26, %v600_v18  ;;  %v1135_v28 = vadd.f32 %v1134_v43, %v608_v19  ;;  %v1083_v29 = vpop.f32.mrb[13].mxu0  ;;  %v1136_v30 = vpop.f32.mrb[13].mxu1 }
 0x351   : > { %v1298_v31 = vcombine.low %v2061_v24, %v2064_v25  ;;  %v1084_v32 = vadd.f32 %v1083_v29, %v604_v22  ;;  %v1085_v34 = vpop.f32.mrb[14].mxu0  ;;  %v1138_v35 = vpop.f32.mrb[14].mxu1  ;;  %v1137_v36 = vadd.f32 %v1136_v30, %v612_v23 }
 0x352   : > { %v1086_v46 = vadd.f32 %v1085_v34, %v600_v18  ;;  %v1139_v37 = vadd.f32 %v1138_v35, %v608_v19  ;;  %v1087_v38 = vpop.f32.mrb[15].mxu0  ;;  %v1140_v39 = vpop.f32.mrb[15].mxu1  ;;  %v1157_v40 = vmax.f32 %v1082_v27, 0.0  ;;  %v1159_v42 = vmax.f32 %v1135_v28, 0.0 }
 0x353   : > { %v1088_v41 = vadd.f32 %v1087_v38, %v604_v22  ;;  %v1141_v47 = vadd.f32 %v1140_v39, %v612_v23  ;;  %v1158_v33 = vmax.f32 %v1084_v32, 0.0  ;;  %v1160_v53 = vmax.f32 %v1137_v36, 0.0 }
 0x354   : > { %v1165_v44 = vmax.f32 %v1086_v46, 0.0  ;;  %v1167_v45 = vmax.f32 %v1139_v37, 0.0 }
 0x355   : > { %v1166_v52 = vmax.f32 %v1088_v41, 0.0  ;;  %v1168_v54 = vmax.f32 %v1141_v47, 0.0 }
 0x356   : > { %v1221_v48 = vmax.f32 %v1157_v40, %v1165_v44  ;;  %v1239_v49 = vmax.f32 %v1159_v42, %v1167_v45 }
 0x357   : > { %v1230_v55 = vmax.f32 %v1158_v33, %v1166_v52  ;;  %v1091_v56 = vpop.f32.mrb[16].mxu0  ;;  %v1144_v57 = vpop.f32.mrb[16].mxu1  ;;  %v1248_v50 = vmax.f32 %v1160_v53, %v1168_v54 }
 0x358   : > { %v1092_v51 = vadd.f32 %v1091_v56, %v600_v18  ;;  %v1145_v58 = vadd.f32 %v1144_v57, %v608_v19  ;;  %v1093_v59 = vpop.f32.mrb[17].mxu0  ;;  %v1146_v60 = vpop.f32.mrb[17].mxu1 }
 0x359   : > { %v1094_v61 = vadd.f32 %v1093_v59, %v604_v22  ;;  %v1147_v62 = vadd.f32 %v1146_v60, %v612_v23  ;;  %v1095_v63 = vpop.f32.mrb[18].mxu0  ;;  %v1148_v0 = vpop.f32.mrb[18].mxu1 }
 0x35a   : > { %v1173_v1 = vmax.f32 %v1092_v51, 0.0  ;;  %v1175_v2 = vmax.f32 %v1145_v58, 0.0  ;;  %v1096_v3 = vadd.f32 %v1095_v63, %v600_v18  ;;  %v1149_v4 = vadd.f32 %v1148_v0, %v608_v19  ;;  %v1097_v5 = vpop.f32.mrb[19].mxu0  ;;  %v1150_v6 = vpop.f32.mrb[19].mxu1 }
 0x35b   : > { %v1174_v7 = vmax.f32 %v1094_v61, 0.0  ;;  %v1176_v8 = vmax.f32 %v1147_v62, 0.0  ;;  %v1098_v9 = vadd.f32 %v1097_v5, %v604_v22  ;;  %v1151_v10 = vadd.f32 %v1150_v6, %v612_v23 }
 0x35c   : > { %v1222_v11 = vmax.f32 %v1221_v48, %v1173_v1  ;;  %v1240_v12 = vmax.f32 %v1239_v49, %v1175_v2  ;;  %v1181_v13 = vmax.f32 %v1096_v3, 0.0  ;;  %v1183_v14 = vmax.f32 %v1149_v4, 0.0 }
 0x35d   : > { %v1231_v15 = vmax.f32 %v1230_v55, %v1174_v7  ;;  %v1249_v17 = vmax.f32 %v1248_v50, %v1176_v8  ;;  %v1182_v20 = vmax.f32 %v1098_v9, 0.0  ;;  %v1184_v21 = vmax.f32 %v1151_v10, 0.0 }
 0x35e   : > { %v1223_v26 = vmax.f32 %v1222_v11, %v1181_v13  ;;  %v1241_v43 = vmax.f32 %v1240_v12, %v1183_v14  ;;  %v1306_v50 = vrot.slane %v1298_v31, %v2054_v16 }
 0x35f   : > { %v1232_v27 = vmax.f32 %v1231_v15, %v1182_v20  ;;  %v1250_v28 = vmax.f32 %v1249_v17, %v1184_v21 }
 0x360   : > { %v1224_v18 = vrot.slane %v1223_v26, 4  ;;  %v1242_v19 = vrot.slane %v1241_v43, 4 }
 0x361   : > { %v1233_v29 = vrot.slane %v1232_v27, 4  ;;  %v1251_v30 = vrot.slane %v1250_v28, 4 }
 0x362   : > { %v1225_v32 = vmax.f32 %v1223_v26, %v1224_v18  ;;  %v1243_v34 = vmax.f32 %v1241_v43, %v1242_v19 }
 0x363   : > { %v1234_v22 = vmax.f32 %v1232_v27, %v1233_v29  ;;  %v1252_v23 = vmax.f32 %v1250_v28, %v1251_v30 }
 0x364   : > { %v1226_v35 = vrot.slane %v1225_v32, 2  ;;  %v1244_v36 = vrot.slane %v1243_v34, 2 }
 0x365   : > { %v1235_v46 = vrot.slane %v1234_v22, 2  ;;  %v1253_v37 = vrot.slane %v1252_v23, 2 }
 0x366   : > { %v1227_v38 = vmax.f32 %v1225_v32, %v1226_v35  ;;  %v1245_v39 = vmax.f32 %v1243_v34, %v1244_v36 }
 0x367   : > { %v1236_v40 = vmax.f32 %v1234_v22, %v1235_v46  ;;  %v1254_v41 = vmax.f32 %v1252_v23, %v1253_v37 }
 0x368   : > { %v1228_v42 = vrot.slane %v1227_v38, 1  ;;  %v1246_v44 = vrot.slane %v1245_v39, 1 }
 0x369   : > { %v1237_v45 = vrot.slane %v1236_v40, 1  ;;  %v1255_v47 = vrot.slane %v1254_v41, 1 }
 0x36a   : > { %v1229_v33 = vmax.f32 %v1227_v38, %v1228_v42  ;;  %v1247_v52 = vmax.f32 %v1245_v39, %v1246_v44 }
 0x36b   : > { %v1238_v53 = vmax.f32 %v1236_v40, %v1237_v45  ;;  %v1256_v48 = vmax.f32 %v1254_v41, %v1255_v47 }
 0x36d   : > { %v1268_v49 = vcombine.low %v1229_v33, %v1238_v53  ;;  %v1269_v54 = vcombine.low %v1247_v52, %v1256_v48 }
 0x36f   : > { %v1290_v55 = vrot.slane %v1268_v49, %v2054_v16  ;;  %v1297_v56 = vrot.slane %v1269_v54, %v2054_v16 }
 0x371   : > { %v1299_v57 = vcombine.low %v1290_v55, %v1297_v56 }
 0x373   : > { %v1313_v51 = vrot.slane %v1299_v57, %v2054_v16 }
 0x375   : > { %v1314_v58 = vcombine.low %v1306_v50, %v1313_v51 }
 0x377   : > { %1317 = vst [vmem:[%s311_s23] sm:$0xff] %v1314_v58 }
 0x378 PF: > { %s20_s29 = sadd.s32 1, %s1653_s29   ;;  %s2109_s24 = smov %s1637_s25 }
 0x379   : > { %p17_p9 = scmp.ge.s32.totalorder %s20_s29, 4   ;;  %s2110_s25 = smov %s1641_s26 }
 0x37a   : > { %s2111_s26 = smov %s1749_s13  ;;  %s2112_s27 = smov %s1649_s28 }
 0x37b   : > { %s2113_s28 = smov %s2115_s8  ;;  %19 = sbr.rel (!%p17_p9) target bundleno = 4 (0x4), region = 92 }
 0x382   :  { %1337 = vsyncpa [#allocation3], 1 }
 0x383   :  { %1339 = vsyncpa [#allocation3 + $0x1], 1 }

// kernel: stnkd_forward.3
= control target key start
LH: loop header
LB: loop body
LE: loop exit
PB: predicated region body
PF: predicated region fallthrough
CT: control target
= control target key end

     0   :  { %v3635_v36 = vmov 1983009808   ;;  %v34_v38 = vlaneseq  ;;  %s4805_s1 = inlined_call_operand.vmem [shape: bf16[1024,512], index: 1, kind: input, shape index: {}]   ;;  %s4806_s0 = inlined_call_operand.vmem [shape: f32[2,1024], index: 0, kind: input, shape index: {}]   ;;  %s4807_s3 = inlined_call_operand.vmem [shape: bf16[512,256], index: 3, kind: input, shape index: {}]   ;;  %s4808_s5 = inlined_call_operand.vmem [shape: bf16[256,256], index: 5, kind: input, shape index: {}]   ;;  %s4809_s2 = inlined_call_operand.vmem [shape: f32[1,512], index: 2, kind: input, shape index: {}]   ;;  %s4810_s4 = inlined_call_operand.vmem [shape: f32[1,256], index: 4, kind: input, shape index: {}]   ;;  %s4811_s6 = inlined_call_operand.vmem [shape: f32[1,256], index: 6, kind: input, shape index: {}]   ;;  %s4812_s7 = inlined_call_operand.vmem [shape: f32[2,256], index: 7, kind: output, shape index: {}]  }
   0x1   :  { %v3105_v0 = vld [vmem:[%s4805_s1 + $0x4] ss:$16 sps:$4 sm:$0xff]   ;;  %v3107_v1 = vld [vmem:[%s4805_s1 + $0xc] ss:$16 sps:$4 sm:$0xff]   ;;  %v3109_v2 = vld [vmem:[%s4805_s1] ss:$16 sps:$4 sm:$0xff]   ;;  %v32_v37 = vunpack.c.l.s4 %v3635_v36 }
   0x2   :  { %1638 = vmatprep.subr.bf16.mxu0 %v3105_v0  ;;  %v3110_v3 = vld [vmem:[%s4805_s1 + $0x8] ss:$16 sps:$4 sm:$0xff]   ;;  %1802 = vmatprep.subr.bf16.mxu1 %v3107_v1  ;;  %v3111_v4 = vld [vmem:[%s4805_s1 + $0x24] ss:$16 sps:$4 sm:$0xff]   ;;  %v3113_v5 = vld [vmem:[%s4805_s1 + $0x2c] ss:$16 sps:$4 sm:$0xff]  }
   0x3   :  { %1639 = vmatpush1.bf16.msra.mxu0 %v3109_v2  ;;  %1803 = vmatpush1.bf16.msra.mxu1 %v3110_v3  ;;  %v3115_v6 = vld [vmem:[%s4805_s1 + $0x20] ss:$16 sps:$4 sm:$0xff]   ;;  %v3116_v7 = vld [vmem:[%s4805_s1 + $0x28] ss:$16 sps:$4 sm:$0xff]   ;;  %v3117_v8 = vld [vmem:[%s4805_s1 + $0x44] ss:$16 sps:$4 sm:$0xff]   ;;  %v33_v42 = vunpack.c.0.s8 %v32_v37 }
   0x4   :  { %1640 = vmatprep.subr.bf16.mxu0 %v3111_v4  ;;  %1804 = vmatprep.subr.bf16.mxu1 %v3113_v5  ;;  %v3119_v9 = vld [vmem:[%s4805_s1 + $0x4c] ss:$16 sps:$4 sm:$0xff]   ;;  %v3121_v10 = vld [vmem:[%s4805_s1 + $0x40] ss:$16 sps:$4 sm:$0xff]   ;;  %v3122_v11 = vld [vmem:[%s4805_s1 + $0x48] ss:$16 sps:$4 sm:$0xff]  }
   0x5   :  { %v3123_v12 = vld [vmem:[%s4805_s1 + $0x64] ss:$16 sps:$4 sm:$0xff]   ;;  %v3125_v13 = vld [vmem:[%s4805_s1 + $0x6c] ss:$16 sps:$4 sm:$0xff]   ;;  %v3127_v14 = vld [vmem:[%s4805_s1 + $0x60] ss:$16 sps:$4 sm:$0xff]  }
   0x6   :  { %v3128_v15 = vld [vmem:[%s4805_s1 + $0x68] ss:$16 sps:$4 sm:$0xff]   ;;  %v3129_v16 = vld [vmem:[%s4805_s1 + $0x84] ss:$16 sps:$4 sm:$0xff]   ;;  %v3131_v17 = vld [vmem:[%s4805_s1 + $0x8c] ss:$16 sps:$4 sm:$0xff]  }
   0x7   :  { %1641 = vmatpush1.bf16.msra.mxu0 %v3115_v6  ;;  %1805 = vmatpush1.bf16.msra.mxu1 %v3116_v7  ;;  %v3133_v18 = vld [vmem:[%s4805_s1 + $0x80] ss:$16 sps:$4 sm:$0xff]   ;;  %v3134_v19 = vld [vmem:[%s4805_s1 + $0x88] ss:$16 sps:$4 sm:$0xff]   ;;  %v3135_v20 = vld [vmem:[%s4805_s1 + $0xa4] ss:$16 sps:$4 sm:$0xff]  }
   0x8   :  { %1642 = vmatprep.subr.bf16.mxu0 %v3117_v8  ;;  %1806 = vmatprep.subr.bf16.mxu1 %v3119_v9  ;;  %v3137_v21 = vld [vmem:[%s4805_s1 + $0xac] ss:$16 sps:$4 sm:$0xff]   ;;  %v3139_v22 = vld [vmem:[%s4805_s1 + $0xa0] ss:$16 sps:$4 sm:$0xff]   ;;  %v3140_v23 = vld [vmem:[%s4805_s1 + $0xa8] ss:$16 sps:$4 sm:$0xff]  }
   0x9   :  { %v3141_v24 = vld [vmem:[%s4805_s1 + $0xc4] ss:$16 sps:$4 sm:$0xff]   ;;  %v3143_v25 = vld [vmem:[%s4805_s1 + $0xcc] ss:$16 sps:$4 sm:$0xff]   ;;  %v3145_v26 = vld [vmem:[%s4805_s1 + $0xc0] ss:$16 sps:$4 sm:$0xff]  }
   0xa   :  { %v3146_v27 = vld [vmem:[%s4805_s1 + $0xc8] ss:$16 sps:$4 sm:$0xff]   ;;  %v3147_v28 = vld [vmem:[%s4805_s1 + $0xe4] ss:$16 sps:$4 sm:$0xff]   ;;  %v3149_v29 = vld [vmem:[%s4805_s1 + $0xec] ss:$16 sps:$4 sm:$0xff]  }
   0xb   :  { %1643 = vmatpush1.bf16.msra.mxu0 %v3121_v10  ;;  %1807 = vmatpush1.bf16.msra.mxu1 %v3122_v11  ;;  %v3151_v30 = vld [vmem:[%s4805_s1 + $0xe0] ss:$16 sps:$4 sm:$0xff]   ;;  %v3152_v31 = vld [vmem:[%s4805_s1 + $0xe8] ss:$16 sps:$4 sm:$0xff]   ;;  %v3153_v32 = vld [vmem:[%s4805_s1 + $0x104] ss:$16 sps:$4 sm:$0xff]  }
   0xc   :  { %1644 = vmatprep.subr.bf16.mxu0 %v3123_v12  ;;  %1808 = vmatprep.subr.bf16.mxu1 %v3125_v13  ;;  %v3155_v33 = vld [vmem:[%s4805_s1 + $0x10c] ss:$16 sps:$4 sm:$0xff]   ;;  %v3157_v34 = vld [vmem:[%s4805_s1 + $0x100] ss:$16 sps:$4 sm:$0xff]   ;;  %v3158_v35 = vld [vmem:[%s4805_s1 + $0x108] ss:$16 sps:$4 sm:$0xff]  }
   0xd   :  { %v3159_v39 = vld [vmem:[%s4805_s1 + $0x124] ss:$16 sps:$4 sm:$0xff]   ;;  %v3161_v40 = vld [vmem:[%s4805_s1 + $0x12c] ss:$16 sps:$4 sm:$0xff]   ;;  %v3163_v41 = vld [vmem:[%s4805_s1 + $0x120] ss:$16 sps:$4 sm:$0xff]  }
   0xe   :  { %v3793_v43 = vshrl.u32 %v34_v38, 7  ;;  %v3164_v44 = vld [vmem:[%s4805_s1 + $0x128] ss:$16 sps:$4 sm:$0xff]   ;;  %v3165_v45 = vld [vmem:[%s4805_s1 + $0x144] ss:$16 sps:$4 sm:$0xff]  }
   0xf   :  { %1645 = vmatpush1.bf16.msra.mxu0 %v3127_v14  ;;  %1809 = vmatpush1.bf16.msra.mxu1 %v3128_v15  ;;  %v3167_v46 = vld [vmem:[%s4805_s1 + $0x14c] ss:$16 sps:$4 sm:$0xff]   ;;  %v3169_v47 = vld [vmem:[%s4805_s1 + $0x140] ss:$16 sps:$4 sm:$0xff]   ;;  %v3170_v48 = vld [vmem:[%s4805_s1 + $0x148] ss:$16 sps:$4 sm:$0xff]  }
  0x10   :  { %1646 = vmatprep.subr.bf16.mxu0 %v3129_v16  ;;  %1810 = vmatprep.subr.bf16.mxu1 %v3131_v17  ;;  %v3811_v49 = vsub.s32 %v33_v42, %v3793_v43  ;;  %v3171_v50 = vld [vmem:[%s4805_s1 + $0x164] ss:$16 sps:$4 sm:$0xff]   ;;  %v3173_v51 = vld [vmem:[%s4805_s1 + $0x16c] ss:$16 sps:$4 sm:$0xff]   ;;  %v3175_v54 = vld [vmem:[%s4805_s1 + $0x160] ss:$16 sps:$4 sm:$0xff]  }
  0x11   :  { %v26_v52 = vld [vmem:[%s4806_s0] sm:$0xff]  ;;  %v3176_v55 = vld [vmem:[%s4805_s1 + $0x168] ss:$16 sps:$4 sm:$0xff]   ;;  %v3179_v57 = vld [vmem:[%s4805_s1 + $0x18c] ss:$16 sps:$4 sm:$0xff]  }
  0x12   :  { %v37_v53 = vrot.slane %v26_v52, %v3811_v49  ;;  %v3177_v56 = vld [vmem:[%s4805_s1 + $0x184] ss:$16 sps:$4 sm:$0xff]   ;;  %v3181_v60 = vld [vmem:[%s4805_s1 + $0x180] ss:$16 sps:$4 sm:$0xff]   ;;  %v3182_v61 = vld [vmem:[%s4805_s1 + $0x188] ss:$16 sps:$4 sm:$0xff]   ;;  %v30_v4 = vcombine.high %v26_v52, %v26_v52 }
  0x13   :  { %1647 = vmatpush1.bf16.msra.mxu0 %v3133_v18  ;;  %1811 = vmatpush1.bf16.msra.mxu1 %v3134_v19  ;;  %v3183_v62 = vld [vmem:[%s4805_s1 + $0x1a4] ss:$16 sps:$4 sm:$0xff]   ;;  %v3185_v63 = vld [vmem:[%s4805_s1 + $0x1ac] ss:$16 sps:$4 sm:$0xff]   ;;  %v3187_v0 = vld [vmem:[%s4805_s1 + $0x1a0] ss:$16 sps:$4 sm:$0xff]  }
  0x14   :  { %1648 = vmatprep.subr.bf16.mxu0 %v3135_v20  ;;  %1812 = vmatprep.subr.bf16.mxu1 %v3137_v21  ;;  %v45_v58 = vcombine.high %v37_v53, %v37_v53  ;;  %v3188_v1 = vld [vmem:[%s4805_s1 + $0x1a8] ss:$16 sps:$4 sm:$0xff]   ;;  %v3189_v2 = vld [vmem:[%s4805_s1 + $0x1c4] ss:$16 sps:$4 sm:$0xff]   ;;  %v3191_v3 = vld [vmem:[%s4805_s1 + $0x1cc] ss:$16 sps:$4 sm:$0xff]   ;;  %v3872_v9 = vrot.slane %v30_v4, %v3811_v49  ;;  %v72_v15 = vpack.c.bf16 %v37_v53, %v37_v53 }
  0x15   :  { %v3193_v5 = vld [vmem:[%s4805_s1 + $0x1c0] ss:$16 sps:$4 sm:$0xff]   ;;  %v3194_v6 = vld [vmem:[%s4805_s1 + $0x1c8] ss:$16 sps:$4 sm:$0xff]   ;;  %v3195_v7 = vld [vmem:[%s4805_s1 + $0x1e4] ss:$16 sps:$4 sm:$0xff]  }
  0x16   :  { %v73_v59 = vpack.c.bf16 %v45_v58, %v45_v58  ;;  %v3197_v8 = vld [vmem:[%s4805_s1 + $0x1ec] ss:$16 sps:$4 sm:$0xff]   ;;  %v3199_v10 = vld [vmem:[%s4805_s1 + $0x1e0] ss:$16 sps:$4 sm:$0xff]   ;;  %v3200_v11 = vld [vmem:[%s4805_s1 + $0x1e8] ss:$16 sps:$4 sm:$0xff]   ;;  %v46_v14 = vcombine.high %v3872_v9, %v3872_v9 }
  0x17   :  { %1649 = vmatpush1.bf16.msra.mxu0 %v3139_v22  ;;  %1813 = vmatpush1.bf16.msra.mxu1 %v3140_v23  ;;  %v3205_v12 = vld [vmem:[%s4805_s1 + $0x204] ss:$16 sps:$4 sm:$0xff]   ;;  %v3208_v13 = vld [vmem:[%s4805_s1 + $0x20c] ss:$16 sps:$4 sm:$0xff]   ;;  %v3203_v16 = vld [vmem:[%s4805_s1 + $0x200] ss:$16 sps:$4 sm:$0xff]  }
  0x18   :  { %1650 = vmatprep.subr.bf16.mxu0 %v3141_v24  ;;  %1814 = vmatprep.subr.bf16.mxu1 %v3143_v25  ;;  %v3206_v17 = vld [vmem:[%s4805_s1 + $0x208] ss:$16 sps:$4 sm:$0xff]   ;;  %v3211_v18 = vld [vmem:[%s4805_s1 + $0x224] ss:$16 sps:$4 sm:$0xff]   ;;  %v3214_v19 = vld [vmem:[%s4805_s1 + $0x22c] ss:$16 sps:$4 sm:$0xff]   ;;  %v75_v20 = vpack.c.bf16 %v46_v14, %v46_v14 }
  0x19   :  { %1670 = vmatprep.mubr.bf16.mxu0 %v73_v59  ;;  %1834 = vmatprep.mubr.bf16.mxu1 %v73_v59  ;;  %v3209_v21 = vld [vmem:[%s4805_s1 + $0x220] ss:$16 sps:$4 sm:$0xff]   ;;  %v3212_v22 = vld [vmem:[%s4805_s1 + $0x228] ss:$16 sps:$4 sm:$0xff]   ;;  %v3217_v23 = vld [vmem:[%s4805_s1 + $0x244] ss:$16 sps:$4 sm:$0xff]  }
  0x1a   :  { %v3220_v24 = vld [vmem:[%s4805_s1 + $0x24c] ss:$16 sps:$4 sm:$0xff]   ;;  %v3215_v25 = vld [vmem:[%s4805_s1 + $0x240] ss:$16 sps:$4 sm:$0xff]   ;;  %v3236_v38 = vld [vmem:[%s4805_s1 + $0x2a8] ss:$16 sps:$4 sm:$0xff]  }
  0x1b   :  { %1651 = vmatpush1.bf16.msra.mxu0 %v3145_v26  ;;  %1815 = vmatpush1.bf16.msra.mxu1 %v3146_v27  ;;  %v3218_v26 = vld [vmem:[%s4805_s1 + $0x248] ss:$16 sps:$4 sm:$0xff]   ;;  %v3223_v27 = vld [vmem:[%s4805_s1 + $0x264] ss:$16 sps:$4 sm:$0xff]   ;;  %v3238_v36 = vld [vmem:[%s4805_s1 + $0x2ac] ss:$16 sps:$4 sm:$0xff]  }
  0x1c   :  { %1652 = vmatprep.subr.bf16.mxu0 %v3147_v28  ;;  %1816 = vmatprep.subr.bf16.mxu1 %v3149_v29  ;;  %v3226_v28 = vld [vmem:[%s4805_s1 + $0x26c] ss:$16 sps:$4 sm:$0xff]   ;;  %v3221_v29 = vld [vmem:[%s4805_s1 + $0x260] ss:$16 sps:$4 sm:$0xff]   ;;  %v3242_v42 = vld [vmem:[%s4805_s1 + $0x2c8] ss:$16 sps:$4 sm:$0xff]  }
  0x1d   :  { %v3233_v37 = vld [vmem:[%s4805_s1 + $0x2a0] ss:$16 sps:$4 sm:$0xff]   ;;  %v3254_v52 = vld [vmem:[%s4805_s1 + $0x308] ss:$16 sps:$4 sm:$0xff]   ;;  %v3259_v53 = vld [vmem:[%s4805_s1 + $0x324] ss:$16 sps:$4 sm:$0xff]  }
  0x1e   :  { %v3268_v58 = vld [vmem:[%s4805_s1 + $0x34c] ss:$16 sps:$4 sm:$0xff]   ;;  %v3263_v59 = vld [vmem:[%s4805_s1 + $0x340] ss:$16 sps:$4 sm:$0xff]   ;;  %v3278_v4 = vld [vmem:[%s4805_s1 + $0x388] ss:$16 sps:$4 sm:$0xff]  }
  0x1f   :  { %1653 = vmatpush1.bf16.msra.mxu0 %v3151_v30  ;;  %1817 = vmatpush1.bf16.msra.mxu1 %v3152_v31  ;;  %v3224_v30 = vld [vmem:[%s4805_s1 + $0x268] ss:$16 sps:$4 sm:$0xff]   ;;  %v3229_v31 = vld [vmem:[%s4805_s1 + $0x284] ss:$16 sps:$4 sm:$0xff]  }
  0x20   :  { %1654 = vmatprep.subr.bf16.mxu0 %v3153_v32  ;;  %1818 = vmatprep.subr.bf16.mxu1 %v3155_v33  ;;  %v3232_v32 = vld [vmem:[%s4805_s1 + $0x28c] ss:$16 sps:$4 sm:$0xff]   ;;  %v3227_v33 = vld [vmem:[%s4805_s1 + $0x280] ss:$16 sps:$4 sm:$0xff]   ;;  %v3290_v14 = vld [vmem:[%s4805_s1 + $0x3c8] ss:$16 sps:$4 sm:$0xff]  }
  0x23   :  { %1655 = vmatpush1.bf16.msra.mxu0 %v3157_v34  ;;  %1819 = vmatpush1.bf16.msra.mxu1 %v3158_v35  ;;  %v3230_v34 = vld [vmem:[%s4805_s1 + $0x288] ss:$16 sps:$4 sm:$0xff]   ;;  %v3235_v35 = vld [vmem:[%s4805_s1 + $0x2a4] ss:$16 sps:$4 sm:$0xff]  }
  0x24   :  { %1656 = vmatprep.subr.bf16.mxu0 %v3159_v39  ;;  %1820 = vmatprep.subr.bf16.mxu1 %v3161_v40  ;;  %v3241_v39 = vld [vmem:[%s4805_s1 + $0x2c4] ss:$16 sps:$4 sm:$0xff]   ;;  %v3244_v40 = vld [vmem:[%s4805_s1 + $0x2cc] ss:$16 sps:$4 sm:$0xff]  }
  0x27   :  { %1657 = vmatpush1.bf16.msra.mxu0 %v3163_v41  ;;  %1821 = vmatpush1.bf16.msra.mxu1 %v3164_v44  ;;  %v3239_v41 = vld [vmem:[%s4805_s1 + $0x2c0] ss:$16 sps:$4 sm:$0xff]   ;;  %v3247_v44 = vld [vmem:[%s4805_s1 + $0x2e4] ss:$16 sps:$4 sm:$0xff]  }
  0x28   :  { %1658 = vmatprep.subr.bf16.mxu0 %v3165_v45  ;;  %1822 = vmatprep.subr.bf16.mxu1 %v3167_v46  ;;  %v3250_v45 = vld [vmem:[%s4805_s1 + $0x2ec] ss:$16 sps:$4 sm:$0xff]   ;;  %v3245_v46 = vld [vmem:[%s4805_s1 + $0x2e0] ss:$16 sps:$4 sm:$0xff]  }
  0x2b   :  { %1659 = vmatpush1.bf16.msra.mxu0 %v3169_v47  ;;  %1823 = vmatpush1.bf16.msra.mxu1 %v3170_v48  ;;  %v3248_v47 = vld [vmem:[%s4805_s1 + $0x2e8] ss:$16 sps:$4 sm:$0xff]   ;;  %v3253_v48 = vld [vmem:[%s4805_s1 + $0x304] ss:$16 sps:$4 sm:$0xff]  }
  0x2c   :  { %1660 = vmatprep.subr.bf16.mxu0 %v3171_v50  ;;  %1824 = vmatprep.subr.bf16.mxu1 %v3173_v51  ;;  %v3256_v50 = vld [vmem:[%s4805_s1 + $0x30c] ss:$16 sps:$4 sm:$0xff]   ;;  %v3251_v51 = vld [vmem:[%s4805_s1 + $0x300] ss:$16 sps:$4 sm:$0xff]  }
  0x2f   :  { %1661 = vmatpush1.bf16.msra.mxu0 %v3175_v54  ;;  %1825 = vmatpush1.bf16.msra.mxu1 %v3176_v55  ;;  %v3262_v54 = vld [vmem:[%s4805_s1 + $0x32c] ss:$16 sps:$4 sm:$0xff]   ;;  %v3257_v55 = vld [vmem:[%s4805_s1 + $0x320] ss:$16 sps:$4 sm:$0xff]  }
  0x30   :  { %1662 = vmatprep.subr.bf16.mxu0 %v3177_v56  ;;  %1826 = vmatprep.subr.bf16.mxu1 %v3179_v57  ;;  %v3260_v56 = vld [vmem:[%s4805_s1 + $0x328] ss:$16 sps:$4 sm:$0xff]   ;;  %v3265_v57 = vld [vmem:[%s4805_s1 + $0x344] ss:$16 sps:$4 sm:$0xff]  }
  0x33   :  { %1663 = vmatpush1.bf16.msra.mxu0 %v3181_v60  ;;  %1827 = vmatpush1.bf16.msra.mxu1 %v3182_v61  ;;  %v3266_v60 = vld [vmem:[%s4805_s1 + $0x348] ss:$16 sps:$4 sm:$0xff]   ;;  %v3271_v61 = vld [vmem:[%s4805_s1 + $0x364] ss:$16 sps:$4 sm:$0xff]  }
  0x34   :  { %1664 = vmatprep.subr.bf16.mxu0 %v3183_v62  ;;  %1828 = vmatprep.subr.bf16.mxu1 %v3185_v63  ;;  %v3274_v62 = vld [vmem:[%s4805_s1 + $0x36c] ss:$16 sps:$4 sm:$0xff]   ;;  %v3269_v63 = vld [vmem:[%s4805_s1 + $0x360] ss:$16 sps:$4 sm:$0xff]  }
  0x37   :  { %1665 = vmatpush1.bf16.msra.mxu0 %v3187_v0  ;;  %1829 = vmatpush1.bf16.msra.mxu1 %v3188_v1  ;;  %v3272_v0 = vld [vmem:[%s4805_s1 + $0x368] ss:$16 sps:$4 sm:$0xff]   ;;  %v3277_v1 = vld [vmem:[%s4805_s1 + $0x384] ss:$16 sps:$4 sm:$0xff]  }
  0x38   :  { %1666 = vmatprep.subr.bf16.mxu0 %v3189_v2  ;;  %1830 = vmatprep.subr.bf16.mxu1 %v3191_v3  ;;  %v3280_v2 = vld [vmem:[%s4805_s1 + $0x38c] ss:$16 sps:$4 sm:$0xff]   ;;  %v3275_v3 = vld [vmem:[%s4805_s1 + $0x380] ss:$16 sps:$4 sm:$0xff]  }
  0x3b   :  { %1667 = vmatpush1.bf16.msra.mxu0 %v3193_v5  ;;  %1831 = vmatpush1.bf16.msra.mxu1 %v3194_v6  ;;  %v3283_v5 = vld [vmem:[%s4805_s1 + $0x3a4] ss:$16 sps:$4 sm:$0xff]   ;;  %v3286_v6 = vld [vmem:[%s4805_s1 + $0x3ac] ss:$16 sps:$4 sm:$0xff]  }
  0x3c   :  { %1668 = vmatprep.subr.bf16.mxu0 %v3195_v7  ;;  %1832 = vmatprep.subr.bf16.mxu1 %v3197_v8  ;;  %v3281_v7 = vld [vmem:[%s4805_s1 + $0x3a0] ss:$16 sps:$4 sm:$0xff]   ;;  %v3284_v8 = vld [vmem:[%s4805_s1 + $0x3a8] ss:$16 sps:$4 sm:$0xff]  }
  0x3f   :  { %1669 = vmatpush1.bf16.msra.mxu0 %v3199_v10  ;;  %1833 = vmatpush1.bf16.msra.mxu1 %v3200_v11  ;;  %v3289_v10 = vld [vmem:[%s4805_s1 + $0x3c4] ss:$16 sps:$4 sm:$0xff]   ;;  %v3292_v11 = vld [vmem:[%s4805_s1 + $0x3cc] ss:$16 sps:$4 sm:$0xff]  }
  0x40   :  { %1679 = vmatprep.subr.bf16.mxu0 %v3205_v12  ;;  %1843 = vmatprep.subr.bf16.mxu1 %v3208_v13  ;;  %v4059_v12 = vld [vmem:[%s4806_s0 + $0x8] sm:$0xff]  ;;  %v3287_v13 = vld [vmem:[%s4805_s1 + $0x3c0] ss:$16 sps:$4 sm:$0xff]  }
  0x42   :  { %1671 = vmatmul.mubr.bf16.vlgmr.msra.gmra.mrb[0].mxu0 %v72_v15  ;;  %1835 = vmatmul.mubr.bf16.vlgmr.msra.gmra.mrb[0].mxu1 %v72_v15  ;;  %v3295_v15 = vld [vmem:[%s4805_s1 + $0x3e4] ss:$16 sps:$4 sm:$0xff]  }
  0x43   :  { %1680 = vmatpush1.bf16.msra.mxu0 %v3203_v16  ;;  %1844 = vmatpush1.bf16.msra.mxu1 %v3206_v17  ;;  %v3298_v16 = vld [vmem:[%s4805_s1 + $0x3ec] ss:$16 sps:$4 sm:$0xff]   ;;  %v4075_v17 = vrot.slane %v4059_v12, %v3811_v49 }
  0x44   :  { %1681 = vmatprep.subr.bf16.mxu0 %v3211_v18  ;;  %1845 = vmatprep.subr.bf16.mxu1 %v3214_v19  ;;  %v3293_v18 = vld [vmem:[%s4805_s1 + $0x3e0] ss:$16 sps:$4 sm:$0xff]   ;;  %v3296_v19 = vld [vmem:[%s4805_s1 + $0x3e8] ss:$16 sps:$4 sm:$0xff]  }
  0x45   :  { %1711 = vmatprep.mubr.bf16.mxu0 %v75_v20  ;;  %1875 = vmatprep.mubr.bf16.mxu1 %v75_v20  ;;  %v3301_v20 = vld [vmem:[%s4805_s1 + $0x404] ss:$16 sps:$4 sm:$0xff]  }
  0x47   :  { %1682 = vmatpush1.bf16.msra.mxu0 %v3209_v21  ;;  %1846 = vmatpush1.bf16.msra.mxu1 %v3212_v22  ;;  %v3304_v21 = vld [vmem:[%s4805_s1 + $0x40c] ss:$16 sps:$4 sm:$0xff]   ;;  %v62_v22 = vcombine.high %v4075_v17, %v4075_v17 }
  0x48   :  { %1683 = vmatprep.subr.bf16.mxu0 %v3217_v23  ;;  %1847 = vmatprep.subr.bf16.mxu1 %v3220_v24  ;;  %v74_v23 = vpack.c.bf16 %v3872_v9, %v3872_v9  ;;  %v3299_v24 = vld [vmem:[%s4805_s1 + $0x400] ss:$16 sps:$4 sm:$0xff]   ;;  %v3310_v9 = vld [vmem:[%s4805_s1 + $0x42c] ss:$16 sps:$4 sm:$0xff]  }
  0x4b   :  { %1684 = vmatpush1.bf16.msra.mxu0 %v3215_v25  ;;  %1848 = vmatpush1.bf16.msra.mxu1 %v3218_v26  ;;  %v3302_v25 = vld [vmem:[%s4805_s1 + $0x408] ss:$16 sps:$4 sm:$0xff]   ;;  %v3307_v26 = vld [vmem:[%s4805_s1 + $0x424] ss:$16 sps:$4 sm:$0xff]  }
  0x4c   :  { %1685 = vmatprep.subr.bf16.mxu0 %v3223_v27  ;;  %1849 = vmatprep.subr.bf16.mxu1 %v3226_v28  ;;  %v77_v27 = vpack.c.bf16 %v62_v22, %v62_v22  ;;  %v3305_v28 = vld [vmem:[%s4805_s1 + $0x420] ss:$16 sps:$4 sm:$0xff]  }
  0x4d   :  { %v3383_v22 = vld [vmem:[%s4805_s1 + $0x5c0] ss:$16 sps:$4 sm:$0xff]  }
  0x4f   :  { %1686 = vmatpush1.bf16.msra.mxu0 %v3221_v29  ;;  %1850 = vmatpush1.bf16.msra.mxu1 %v3224_v30  ;;  %v3308_v29 = vld [vmem:[%s4805_s1 + $0x428] ss:$16 sps:$4 sm:$0xff]   ;;  %v3313_v30 = vld [vmem:[%s4805_s1 + $0x444] ss:$16 sps:$4 sm:$0xff]  }
  0x50   :  { %1687 = vmatprep.subr.bf16.mxu0 %v3229_v31  ;;  %1851 = vmatprep.subr.bf16.mxu1 %v3232_v32  ;;  %v3316_v31 = vld [vmem:[%s4805_s1 + $0x44c] ss:$16 sps:$4 sm:$0xff]   ;;  %v3311_v32 = vld [vmem:[%s4805_s1 + $0x440] ss:$16 sps:$4 sm:$0xff]  }
  0x53   :  { %1688 = vmatpush1.bf16.msra.mxu0 %v3227_v33  ;;  %1852 = vmatpush1.bf16.msra.mxu1 %v3230_v34  ;;  %v3314_v33 = vld [vmem:[%s4805_s1 + $0x448] ss:$16 sps:$4 sm:$0xff]   ;;  %v3319_v34 = vld [vmem:[%s4805_s1 + $0x464] ss:$16 sps:$4 sm:$0xff]  }
  0x54   :  { %1689 = vmatprep.subr.bf16.mxu0 %v3235_v35  ;;  %1853 = vmatprep.subr.bf16.mxu1 %v3238_v36  ;;  %v3322_v35 = vld [vmem:[%s4805_s1 + $0x46c] ss:$16 sps:$4 sm:$0xff]   ;;  %v3317_v36 = vld [vmem:[%s4805_s1 + $0x460] ss:$16 sps:$4 sm:$0xff]  }
  0x57   :  { %1690 = vmatpush1.bf16.msra.mxu0 %v3233_v37  ;;  %1854 = vmatpush1.bf16.msra.mxu1 %v3236_v38  ;;  %v3320_v37 = vld [vmem:[%s4805_s1 + $0x468] ss:$16 sps:$4 sm:$0xff]   ;;  %v3325_v38 = vld [vmem:[%s4805_s1 + $0x484] ss:$16 sps:$4 sm:$0xff]  }
  0x58   :  { %1691 = vmatprep.subr.bf16.mxu0 %v3241_v39  ;;  %1855 = vmatprep.subr.bf16.mxu1 %v3244_v40  ;;  %v3328_v39 = vld [vmem:[%s4805_s1 + $0x48c] ss:$16 sps:$4 sm:$0xff]   ;;  %v3323_v40 = vld [vmem:[%s4805_s1 + $0x480] ss:$16 sps:$4 sm:$0xff]  }
  0x5b   :  { %1692 = vmatpush1.bf16.msra.mxu0 %v3239_v41  ;;  %1856 = vmatpush1.bf16.msra.mxu1 %v3242_v42  ;;  %v3326_v41 = vld [vmem:[%s4805_s1 + $0x488] ss:$16 sps:$4 sm:$0xff]   ;;  %v3331_v42 = vld [vmem:[%s4805_s1 + $0x4a4] ss:$16 sps:$4 sm:$0xff]  }
  0x5c   :  { %1693 = vmatprep.subr.bf16.mxu0 %v3247_v44  ;;  %1857 = vmatprep.subr.bf16.mxu1 %v3250_v45  ;;  %v3334_v44 = vld [vmem:[%s4805_s1 + $0x4ac] ss:$16 sps:$4 sm:$0xff]   ;;  %v3329_v45 = vld [vmem:[%s4805_s1 + $0x4a0] ss:$16 sps:$4 sm:$0xff]  }
  0x5f   :  { %1694 = vmatpush1.bf16.msra.mxu0 %v3245_v46  ;;  %1858 = vmatpush1.bf16.msra.mxu1 %v3248_v47  ;;  %v3332_v46 = vld [vmem:[%s4805_s1 + $0x4a8] ss:$16 sps:$4 sm:$0xff]   ;;  %v3337_v47 = vld [vmem:[%s4805_s1 + $0x4c4] ss:$16 sps:$4 sm:$0xff]  }
  0x60   :  { %1695 = vmatprep.subr.bf16.mxu0 %v3253_v48  ;;  %1859 = vmatprep.subr.bf16.mxu1 %v3256_v50  ;;  %v3340_v48 = vld [vmem:[%s4805_s1 + $0x4cc] ss:$16 sps:$4 sm:$0xff]   ;;  %v3335_v50 = vld [vmem:[%s4805_s1 + $0x4c0] ss:$16 sps:$4 sm:$0xff]  }
  0x63   :  { %1696 = vmatpush1.bf16.msra.mxu0 %v3251_v51  ;;  %1860 = vmatpush1.bf16.msra.mxu1 %v3254_v52  ;;  %v3338_v51 = vld [vmem:[%s4805_s1 + $0x4c8] ss:$16 sps:$4 sm:$0xff]   ;;  %v3343_v52 = vld [vmem:[%s4805_s1 + $0x4e4] ss:$16 sps:$4 sm:$0xff]  }
  0x64   :  { %1697 = vmatprep.subr.bf16.mxu0 %v3259_v53  ;;  %1861 = vmatprep.subr.bf16.mxu1 %v3262_v54  ;;  %v3346_v53 = vld [vmem:[%s4805_s1 + $0x4ec] ss:$16 sps:$4 sm:$0xff]   ;;  %v3341_v54 = vld [vmem:[%s4805_s1 + $0x4e0] ss:$16 sps:$4 sm:$0xff]  }
  0x67   :  { %1698 = vmatpush1.bf16.msra.mxu0 %v3257_v55  ;;  %1862 = vmatpush1.bf16.msra.mxu1 %v3260_v56  ;;  %v3344_v55 = vld [vmem:[%s4805_s1 + $0x4e8] ss:$16 sps:$4 sm:$0xff]   ;;  %v3349_v56 = vld [vmem:[%s4805_s1 + $0x504] ss:$16 sps:$4 sm:$0xff]  }
  0x68   :  { %1699 = vmatprep.subr.bf16.mxu0 %v3265_v57  ;;  %1863 = vmatprep.subr.bf16.mxu1 %v3268_v58  ;;  %v3352_v57 = vld [vmem:[%s4805_s1 + $0x50c] ss:$16 sps:$4 sm:$0xff]   ;;  %v3347_v58 = vld [vmem:[%s4805_s1 + $0x500] ss:$16 sps:$4 sm:$0xff]  }
  0x6b   :  { %1700 = vmatpush1.bf16.msra.mxu0 %v3263_v59  ;;  %1864 = vmatpush1.bf16.msra.mxu1 %v3266_v60  ;;  %v3350_v59 = vld [vmem:[%s4805_s1 + $0x508] ss:$16 sps:$4 sm:$0xff]   ;;  %v3355_v60 = vld [vmem:[%s4805_s1 + $0x524] ss:$16 sps:$4 sm:$0xff]  }
  0x6c   :  { %1701 = vmatprep.subr.bf16.mxu0 %v3271_v61  ;;  %1865 = vmatprep.subr.bf16.mxu1 %v3274_v62  ;;  %v3358_v61 = vld [vmem:[%s4805_s1 + $0x52c] ss:$16 sps:$4 sm:$0xff]   ;;  %v3353_v62 = vld [vmem:[%s4805_s1 + $0x520] ss:$16 sps:$4 sm:$0xff]  }
  0x6f   :  { %1702 = vmatpush1.bf16.msra.mxu0 %v3269_v63  ;;  %1866 = vmatpush1.bf16.msra.mxu1 %v3272_v0  ;;  %v3356_v63 = vld [vmem:[%s4805_s1 + $0x528] ss:$16 sps:$4 sm:$0xff]   ;;  %v3361_v0 = vld [vmem:[%s4805_s1 + $0x544] ss:$16 sps:$4 sm:$0xff]  }
  0x70   :  { %1703 = vmatprep.subr.bf16.mxu0 %v3277_v1  ;;  %1867 = vmatprep.subr.bf16.mxu1 %v3280_v2  ;;  %v3364_v1 = vld [vmem:[%s4805_s1 + $0x54c] ss:$16 sps:$4 sm:$0xff]   ;;  %v3359_v2 = vld [vmem:[%s4805_s1 + $0x540] ss:$16 sps:$4 sm:$0xff]  }
  0x73   :  { %1704 = vmatpush1.bf16.msra.mxu0 %v3275_v3  ;;  %1868 = vmatpush1.bf16.msra.mxu1 %v3278_v4  ;;  %v3362_v3 = vld [vmem:[%s4805_s1 + $0x548] ss:$16 sps:$4 sm:$0xff]   ;;  %v3367_v4 = vld [vmem:[%s4805_s1 + $0x564] ss:$16 sps:$4 sm:$0xff]  }
  0x74   :  { %1705 = vmatprep.subr.bf16.mxu0 %v3283_v5  ;;  %1869 = vmatprep.subr.bf16.mxu1 %v3286_v6  ;;  %v3370_v5 = vld [vmem:[%s4805_s1 + $0x56c] ss:$16 sps:$4 sm:$0xff]   ;;  %v3365_v6 = vld [vmem:[%s4805_s1 + $0x560] ss:$16 sps:$4 sm:$0xff]  }
  0x77   :  { %1706 = vmatpush1.bf16.msra.mxu0 %v3281_v7  ;;  %1870 = vmatpush1.bf16.msra.mxu1 %v3284_v8  ;;  %v3368_v7 = vld [vmem:[%s4805_s1 + $0x568] ss:$16 sps:$4 sm:$0xff]   ;;  %v3373_v8 = vld [vmem:[%s4805_s1 + $0x584] ss:$16 sps:$4 sm:$0xff]  }
  0x78   :  { %1707 = vmatprep.subr.bf16.mxu0 %v3289_v10  ;;  %1871 = vmatprep.subr.bf16.mxu1 %v3292_v11  ;;  %v3376_v10 = vld [vmem:[%s4805_s1 + $0x58c] ss:$16 sps:$4 sm:$0xff]   ;;  %v3371_v11 = vld [vmem:[%s4805_s1 + $0x580] ss:$16 sps:$4 sm:$0xff]  }
  0x7b   :  { %1708 = vmatpush1.bf16.msra.mxu0 %v3287_v13  ;;  %1872 = vmatpush1.bf16.msra.mxu1 %v3290_v14  ;;  %v3374_v13 = vld [vmem:[%s4805_s1 + $0x588] ss:$16 sps:$4 sm:$0xff]   ;;  %v3379_v14 = vld [vmem:[%s4805_s1 + $0x5a4] ss:$16 sps:$4 sm:$0xff]  }
  0x7c   :  { %1709 = vmatprep.subr.bf16.mxu0 %v3295_v15  ;;  %1873 = vmatprep.subr.bf16.mxu1 %v3298_v16  ;;  %v3382_v15 = vld [vmem:[%s4805_s1 + $0x5ac] ss:$16 sps:$4 sm:$0xff]   ;;  %v3377_v16 = vld [vmem:[%s4805_s1 + $0x5a0] ss:$16 sps:$4 sm:$0xff]  }
  0x7f   :  { %1710 = vmatpush1.bf16.msra.mxu0 %v3293_v18  ;;  %1874 = vmatpush1.bf16.msra.mxu1 %v3296_v19  ;;  %v3380_v18 = vld [vmem:[%s4805_s1 + $0x5a8] ss:$16 sps:$4 sm:$0xff]   ;;  %v3385_v19 = vld [vmem:[%s4805_s1 + $0x5c4] ss:$16 sps:$4 sm:$0xff]  }
  0x80   :  { %1720 = vmatprep.subr.bf16.mxu0 %v3301_v20  ;;  %1884 = vmatprep.subr.bf16.mxu1 %v3304_v21  ;;  %v3388_v20 = vld [vmem:[%s4805_s1 + $0x5cc] ss:$16 sps:$4 sm:$0xff]   ;;  %v47_v21 = vcombine.high %v4059_v12, %v4059_v12 }
  0x81   :  { %v3394_v12 = vld [vmem:[%s4805_s1 + $0x5ec] ss:$16 sps:$4 sm:$0xff]  }
  0x82   :  { %1712 = vmatmul.mubr.bf16.vlgmr.msra.gmra.mrb[0].mxu0 %v74_v23  ;;  %1876 = vmatmul.mubr.bf16.vlgmr.msra.gmra.mrb[0].mxu1 %v74_v23  ;;  %v3386_v23 = vld [vmem:[%s4805_s1 + $0x5c8] ss:$16 sps:$4 sm:$0xff]  }
  0x83   :  { %1721 = vmatpush1.bf16.msra.mxu0 %v3299_v24  ;;  %1885 = vmatpush1.bf16.msra.mxu1 %v3302_v25  ;;  %v3391_v24 = vld [vmem:[%s4805_s1 + $0x5e4] ss:$16 sps:$4 sm:$0xff]   ;;  %v4276_v25 = vrot.slane %v47_v21, %v3811_v49  ;;  %v3400_v49 = vld [vmem:[%s4805_s1 + $0x60c] ss:$16 sps:$4 sm:$0xff]  }
  0x84   :  { %1722 = vmatprep.subr.bf16.mxu0 %v3307_v26  ;;  %1886 = vmatprep.subr.bf16.mxu1 %v3310_v9  ;;  %v3389_v26 = vld [vmem:[%s4805_s1 + $0x5e0] ss:$16 sps:$4 sm:$0xff]   ;;  %v3392_v9 = vld [vmem:[%s4805_s1 + $0x5e8] ss:$16 sps:$4 sm:$0xff]   ;;  %v3475_v21 = vld [vmem:[%s4805_s1 + $0x7a4] ss:$16 sps:$4 sm:$0xff]  }
  0x85   :  { %1752 = vmatprep.mubr.bf16.mxu0 %v77_v27  ;;  %1916 = vmatprep.mubr.bf16.mxu1 %v77_v27  ;;  %v3397_v27 = vld [vmem:[%s4805_s1 + $0x604] ss:$16 sps:$4 sm:$0xff]  }
  0x87   :  { %1723 = vmatpush1.bf16.msra.mxu0 %v3305_v28  ;;  %1887 = vmatpush1.bf16.msra.mxu1 %v3308_v29  ;;  %v3395_v28 = vld [vmem:[%s4805_s1 + $0x600] ss:$16 sps:$4 sm:$0xff]   ;;  %v3398_v29 = vld [vmem:[%s4805_s1 + $0x608] ss:$16 sps:$4 sm:$0xff]  }
  0x88   :  { %1724 = vmatprep.subr.bf16.mxu0 %v3313_v30  ;;  %1888 = vmatprep.subr.bf16.mxu1 %v3316_v31  ;;  %v63_v30 = vcombine.high %v4276_v25, %v4276_v25  ;;  %v76_v31 = vpack.c.bf16 %v4075_v17, %v4075_v17  ;;  %v3404_v17 = vld [vmem:[%s4805_s1 + $0x628] ss:$16 sps:$4 sm:$0xff]  }
  0x8b   :  { %1725 = vmatpush1.bf16.msra.mxu0 %v3311_v32  ;;  %1889 = vmatpush1.bf16.msra.mxu1 %v3314_v33  ;;  %v3403_v32 = vld [vmem:[%s4805_s1 + $0x624] ss:$16 sps:$4 sm:$0xff]   ;;  %v3406_v33 = vld [vmem:[%s4805_s1 + $0x62c] ss:$16 sps:$4 sm:$0xff]  }
  0x8c   :  { %1726 = vmatprep.subr.bf16.mxu0 %v3319_v34  ;;  %1890 = vmatprep.subr.bf16.mxu1 %v3322_v35  ;;  %v3401_v34 = vld [vmem:[%s4805_s1 + $0x620] ss:$16 sps:$4 sm:$0xff]   ;;  %v79_v35 = vpack.c.bf16 %v63_v30, %v63_v30  ;;  %v3488_v30 = vld [vmem:[%s4805_s1 + $0x7e8] ss:$16 sps:$4 sm:$0xff]  }
  0x8f   :  { %1727 = vmatpush1.bf16.msra.mxu0 %v3317_v36  ;;  %1891 = vmatpush1.bf16.msra.mxu1 %v3320_v37  ;;  %v3409_v36 = vld [vmem:[%s4805_s1 + $0x644] ss:$16 sps:$4 sm:$0xff]   ;;  %v3412_v37 = vld [vmem:[%s4805_s1 + $0x64c] ss:$16 sps:$4 sm:$0xff]  }
  0x90   :  { %1728 = vmatprep.subr.bf16.mxu0 %v3325_v38  ;;  %1892 = vmatprep.subr.bf16.mxu1 %v3328_v39  ;;  %v3407_v38 = vld [vmem:[%s4805_s1 + $0x640] ss:$16 sps:$4 sm:$0xff]   ;;  %v3410_v39 = vld [vmem:[%s4805_s1 + $0x648] ss:$16 sps:$4 sm:$0xff]  }
  0x93   :  { %1729 = vmatpush1.bf16.msra.mxu0 %v3323_v40  ;;  %1893 = vmatpush1.bf16.msra.mxu1 %v3326_v41  ;;  %v3415_v40 = vld [vmem:[%s4805_s1 + $0x664] ss:$16 sps:$4 sm:$0xff]   ;;  %v3418_v41 = vld [vmem:[%s4805_s1 + $0x66c] ss:$16 sps:$4 sm:$0xff]  }
  0x94   :  { %1730 = vmatprep.subr.bf16.mxu0 %v3331_v42  ;;  %1894 = vmatprep.subr.bf16.mxu1 %v3334_v44  ;;  %v3413_v42 = vld [vmem:[%s4805_s1 + $0x660] ss:$16 sps:$4 sm:$0xff]   ;;  %v3416_v44 = vld [vmem:[%s4805_s1 + $0x668] ss:$16 sps:$4 sm:$0xff]  }
  0x97   :  { %1731 = vmatpush1.bf16.msra.mxu0 %v3329_v45  ;;  %1895 = vmatpush1.bf16.msra.mxu1 %v3332_v46  ;;  %v3421_v45 = vld [vmem:[%s4805_s1 + $0x684] ss:$16 sps:$4 sm:$0xff]   ;;  %v3424_v46 = vld [vmem:[%s4805_s1 + $0x68c] ss:$16 sps:$4 sm:$0xff]  }
  0x98   :  { %1732 = vmatprep.subr.bf16.mxu0 %v3337_v47  ;;  %1896 = vmatprep.subr.bf16.mxu1 %v3340_v48  ;;  %v3419_v47 = vld [vmem:[%s4805_s1 + $0x680] ss:$16 sps:$4 sm:$0xff]   ;;  %v3422_v48 = vld [vmem:[%s4805_s1 + $0x688] ss:$16 sps:$4 sm:$0xff]  }
  0x9b   :  { %1733 = vmatpush1.bf16.msra.mxu0 %v3335_v50  ;;  %1897 = vmatpush1.bf16.msra.mxu1 %v3338_v51  ;;  %v3427_v50 = vld [vmem:[%s4805_s1 + $0x6a4] ss:$16 sps:$4 sm:$0xff]   ;;  %v3430_v51 = vld [vmem:[%s4805_s1 + $0x6ac] ss:$16 sps:$4 sm:$0xff]  }
  0x9c   :  { %1734 = vmatprep.subr.bf16.mxu0 %v3343_v52  ;;  %1898 = vmatprep.subr.bf16.mxu1 %v3346_v53  ;;  %v3425_v52 = vld [vmem:[%s4805_s1 + $0x6a0] ss:$16 sps:$4 sm:$0xff]   ;;  %v3428_v53 = vld [vmem:[%s4805_s1 + $0x6a8] ss:$16 sps:$4 sm:$0xff]  }
  0x9f   :  { %1735 = vmatpush1.bf16.msra.mxu0 %v3341_v54  ;;  %1899 = vmatpush1.bf16.msra.mxu1 %v3344_v55  ;;  %v3433_v54 = vld [vmem:[%s4805_s1 + $0x6c4] ss:$16 sps:$4 sm:$0xff]   ;;  %v3436_v55 = vld [vmem:[%s4805_s1 + $0x6cc] ss:$16 sps:$4 sm:$0xff]  }
  0xa0   :  { %1736 = vmatprep.subr.bf16.mxu0 %v3349_v56  ;;  %1900 = vmatprep.subr.bf16.mxu1 %v3352_v57  ;;  %v3431_v56 = vld [vmem:[%s4805_s1 + $0x6c0] ss:$16 sps:$4 sm:$0xff]   ;;  %v3434_v57 = vld [vmem:[%s4805_s1 + $0x6c8] ss:$16 sps:$4 sm:$0xff]  }
  0xa3   :  { %1737 = vmatpush1.bf16.msra.mxu0 %v3347_v58  ;;  %1901 = vmatpush1.bf16.msra.mxu1 %v3350_v59  ;;  %v3439_v58 = vld [vmem:[%s4805_s1 + $0x6e4] ss:$16 sps:$4 sm:$0xff]   ;;  %v3442_v59 = vld [vmem:[%s4805_s1 + $0x6ec] ss:$16 sps:$4 sm:$0xff]  }
  0xa4   :  { %1738 = vmatprep.subr.bf16.mxu0 %v3355_v60  ;;  %1902 = vmatprep.subr.bf16.mxu1 %v3358_v61  ;;  %v3437_v60 = vld [vmem:[%s4805_s1 + $0x6e0] ss:$16 sps:$4 sm:$0xff]   ;;  %v3440_v61 = vld [vmem:[%s4805_s1 + $0x6e8] ss:$16 sps:$4 sm:$0xff]  }
  0xa7   :  { %1739 = vmatpush1.bf16.msra.mxu0 %v3353_v62  ;;  %1903 = vmatpush1.bf16.msra.mxu1 %v3356_v63  ;;  %v3445_v62 = vld [vmem:[%s4805_s1 + $0x704] ss:$16 sps:$4 sm:$0xff]   ;;  %v3448_v63 = vld [vmem:[%s4805_s1 + $0x70c] ss:$16 sps:$4 sm:$0xff]  }
  0xa8   :  { %1740 = vmatprep.subr.bf16.mxu0 %v3361_v0  ;;  %1904 = vmatprep.subr.bf16.mxu1 %v3364_v1  ;;  %v3443_v0 = vld [vmem:[%s4805_s1 + $0x700] ss:$16 sps:$4 sm:$0xff]   ;;  %v3446_v1 = vld [vmem:[%s4805_s1 + $0x708] ss:$16 sps:$4 sm:$0xff]  }
  0xab   :  { %1741 = vmatpush1.bf16.msra.mxu0 %v3359_v2  ;;  %1905 = vmatpush1.bf16.msra.mxu1 %v3362_v3  ;;  %v3451_v2 = vld [vmem:[%s4805_s1 + $0x724] ss:$16 sps:$4 sm:$0xff]   ;;  %v3454_v3 = vld [vmem:[%s4805_s1 + $0x72c] ss:$16 sps:$4 sm:$0xff]  }
  0xac   :  { %1742 = vmatprep.subr.bf16.mxu0 %v3367_v4  ;;  %1906 = vmatprep.subr.bf16.mxu1 %v3370_v5  ;;  %v3449_v4 = vld [vmem:[%s4805_s1 + $0x720] ss:$16 sps:$4 sm:$0xff]   ;;  %v3452_v5 = vld [vmem:[%s4805_s1 + $0x728] ss:$16 sps:$4 sm:$0xff]  }
  0xaf   :  { %1743 = vmatpush1.bf16.msra.mxu0 %v3365_v6  ;;  %1907 = vmatpush1.bf16.msra.mxu1 %v3368_v7  ;;  %v3457_v6 = vld [vmem:[%s4805_s1 + $0x744] ss:$16 sps:$4 sm:$0xff]   ;;  %v3460_v7 = vld [vmem:[%s4805_s1 + $0x74c] ss:$16 sps:$4 sm:$0xff]  }
  0xb0   :  { %1744 = vmatprep.subr.bf16.mxu0 %v3373_v8  ;;  %1908 = vmatprep.subr.bf16.mxu1 %v3376_v10  ;;  %v3455_v8 = vld [vmem:[%s4805_s1 + $0x740] ss:$16 sps:$4 sm:$0xff]   ;;  %v3458_v10 = vld [vmem:[%s4805_s1 + $0x748] ss:$16 sps:$4 sm:$0xff]  }
  0xb3   :  { %1745 = vmatpush1.bf16.msra.mxu0 %v3371_v11  ;;  %1909 = vmatpush1.bf16.msra.mxu1 %v3374_v13  ;;  %v3463_v11 = vld [vmem:[%s4805_s1 + $0x764] ss:$16 sps:$4 sm:$0xff]   ;;  %v3466_v13 = vld [vmem:[%s4805_s1 + $0x76c] ss:$16 sps:$4 sm:$0xff]  }
  0xb4   :  { %1746 = vmatprep.subr.bf16.mxu0 %v3379_v14  ;;  %1910 = vmatprep.subr.bf16.mxu1 %v3382_v15  ;;  %v3461_v14 = vld [vmem:[%s4805_s1 + $0x760] ss:$16 sps:$4 sm:$0xff]   ;;  %v3464_v15 = vld [vmem:[%s4805_s1 + $0x768] ss:$16 sps:$4 sm:$0xff]  }
  0xb7   :  { %1747 = vmatpush1.bf16.msra.mxu0 %v3377_v16  ;;  %1911 = vmatpush1.bf16.msra.mxu1 %v3380_v18  ;;  %v3469_v16 = vld [vmem:[%s4805_s1 + $0x784] ss:$16 sps:$4 sm:$0xff]   ;;  %v3472_v18 = vld [vmem:[%s4805_s1 + $0x78c] ss:$16 sps:$4 sm:$0xff]  }
  0xb8   :  { %1748 = vmatprep.subr.bf16.mxu0 %v3385_v19  ;;  %1912 = vmatprep.subr.bf16.mxu1 %v3388_v20  ;;  %v3467_v19 = vld [vmem:[%s4805_s1 + $0x780] ss:$16 sps:$4 sm:$0xff]   ;;  %v3470_v20 = vld [vmem:[%s4805_s1 + $0x788] ss:$16 sps:$4 sm:$0xff]  }
  0xbb   :  { %1749 = vmatpush1.bf16.msra.mxu0 %v3383_v22  ;;  %1913 = vmatpush1.bf16.msra.mxu1 %v3386_v23  ;;  %v3478_v22 = vld [vmem:[%s4805_s1 + $0x7ac] ss:$16 sps:$4 sm:$0xff]   ;;  %v3473_v23 = vld [vmem:[%s4805_s1 + $0x7a0] ss:$16 sps:$4 sm:$0xff]  }
  0xbc   :  { %1750 = vmatprep.subr.bf16.mxu0 %v3391_v24  ;;  %1914 = vmatprep.subr.bf16.mxu1 %v3394_v12  ;;  %v3476_v24 = vld [vmem:[%s4805_s1 + $0x7a8] ss:$16 sps:$4 sm:$0xff]   ;;  %v3481_v12 = vld [vmem:[%s4805_s1 + $0x7c4] ss:$16 sps:$4 sm:$0xff]  }
  0xbf   :  { %1751 = vmatpush1.bf16.msra.mxu0 %v3389_v26  ;;  %1915 = vmatpush1.bf16.msra.mxu1 %v3392_v9  ;;  %v3484_v26 = vld [vmem:[%s4805_s1 + $0x7cc] ss:$16 sps:$4 sm:$0xff]   ;;  %v3479_v9 = vld [vmem:[%s4805_s1 + $0x7c0] ss:$16 sps:$4 sm:$0xff]  }
  0xc0   :  { %1761 = vmatprep.subr.bf16.mxu0 %v3397_v27  ;;  %1925 = vmatprep.subr.bf16.mxu1 %v3400_v49  ;;  %v3482_v27 = vld [vmem:[%s4805_s1 + $0x7c8] ss:$16 sps:$4 sm:$0xff]   ;;  %v3487_v49 = vld [vmem:[%s4805_s1 + $0x7e4] ss:$16 sps:$4 sm:$0xff]  }
  0xc2   :  { %1753 = vmatmul.mubr.bf16.vlgmr.msra.gmra.mrb[0].mxu0 %v76_v31  ;;  %1917 = vmatmul.mubr.bf16.vlgmr.msra.gmra.mrb[0].mxu1 %v76_v31  ;;  %v3493_v31 = vld [vmem:[%s4807_s3 + $0x4] ss:$8 sps:$4 sm:$0xff]  }
  0xc3   :  { %1762 = vmatpush1.bf16.msra.mxu0 %v3395_v28  ;;  %1926 = vmatpush1.bf16.msra.mxu1 %v3398_v29  ;;  %v3490_v28 = vld [vmem:[%s4805_s1 + $0x7ec] ss:$16 sps:$4 sm:$0xff]   ;;  %v3485_v29 = vld [vmem:[%s4805_s1 + $0x7e0] ss:$16 sps:$4 sm:$0xff]  }
  0xc4   :  { %1763 = vmatprep.subr.bf16.mxu0 %v3403_v32  ;;  %1927 = vmatprep.subr.bf16.mxu1 %v3406_v33  ;;  %v78_v32 = vpack.c.bf16 %v4276_v25, %v4276_v25  ;;  %v3491_v33 = vld [vmem:[%s4807_s3] ss:$8 sps:$4 sm:$0xff]   ;;  %v3499_v25 = vld [vmem:[%s4807_s3 + $0x24] ss:$8 sps:$4 sm:$0xff]  }
  0xc5   :  { %1793 = vmatprep.mubr.bf16.mxu0 %v79_v35  ;;  %1957 = vmatprep.mubr.bf16.mxu1 %v79_v35  ;;  %v3497_v35 = vld [vmem:[%s4807_s3 + $0x20] ss:$8 sps:$4 sm:$0xff]  }
  0xc7   :  { %1764 = vmatpush1.bf16.msra.mxu0 %v3401_v34  ;;  %1928 = vmatpush1.bf16.msra.mxu1 %v3404_v17  ;;  %v3496_v34 = vld [vmem:[%s4807_s3 + $0x14] ss:$8 sps:$4 sm:$0xff]   ;;  %v3494_v17 = vld [vmem:[%s4807_s3 + $0x10] ss:$8 sps:$4 sm:$0xff]  }
  0xc8   :  { %1765 = vmatprep.subr.bf16.mxu0 %v3409_v36  ;;  %1929 = vmatprep.subr.bf16.mxu1 %v3412_v37  ;;  %v3502_v36 = vld [vmem:[%s4807_s3 + $0x34] ss:$8 sps:$4 sm:$0xff]   ;;  %v3500_v37 = vld [vmem:[%s4807_s3 + $0x30] ss:$8 sps:$4 sm:$0xff]  }
  0xcb   :  { %1766 = vmatpush1.bf16.msra.mxu0 %v3407_v38  ;;  %1930 = vmatpush1.bf16.msra.mxu1 %v3410_v39  ;;  %v3505_v38 = vld [vmem:[%s4807_s3 + $0x44] ss:$8 sps:$4 sm:$0xff]   ;;  %v3503_v39 = vld [vmem:[%s4807_s3 + $0x40] ss:$8 sps:$4 sm:$0xff]  }
  0xcc   :  { %1767 = vmatprep.subr.bf16.mxu0 %v3415_v40  ;;  %1931 = vmatprep.subr.bf16.mxu1 %v3418_v41  ;;  %v3508_v40 = vld [vmem:[%s4807_s3 + $0x54] ss:$8 sps:$4 sm:$0xff]   ;;  %v3506_v41 = vld [vmem:[%s4807_s3 + $0x50] ss:$8 sps:$4 sm:$0xff]  }
  0xcf   :  { %1768 = vmatpush1.bf16.msra.mxu0 %v3413_v42  ;;  %1932 = vmatpush1.bf16.msra.mxu1 %v3416_v44  ;;  %v3511_v42 = vld [vmem:[%s4807_s3 + $0x64] ss:$8 sps:$4 sm:$0xff]   ;;  %v3509_v44 = vld [vmem:[%s4807_s3 + $0x60] ss:$8 sps:$4 sm:$0xff]  }
  0xd0   :  { %1769 = vmatprep.subr.bf16.mxu0 %v3421_v45  ;;  %1933 = vmatprep.subr.bf16.mxu1 %v3424_v46  ;;  %v3514_v45 = vld [vmem:[%s4807_s3 + $0x74] ss:$8 sps:$4 sm:$0xff]   ;;  %v3512_v46 = vld [vmem:[%s4807_s3 + $0x70] ss:$8 sps:$4 sm:$0xff]  }
  0xd3   :  { %1770 = vmatpush1.bf16.msra.mxu0 %v3419_v47  ;;  %1934 = vmatpush1.bf16.msra.mxu1 %v3422_v48  ;;  %v3517_v47 = vld [vmem:[%s4807_s3 + $0x84] ss:$8 sps:$4 sm:$0xff]   ;;  %v3515_v48 = vld [vmem:[%s4807_s3 + $0x80] ss:$8 sps:$4 sm:$0xff]  }
  0xd4   :  { %1771 = vmatprep.subr.bf16.mxu0 %v3427_v50  ;;  %1935 = vmatprep.subr.bf16.mxu1 %v3430_v51  ;;  %v3520_v50 = vld [vmem:[%s4807_s3 + $0x94] ss:$8 sps:$4 sm:$0xff]   ;;  %v3518_v51 = vld [vmem:[%s4807_s3 + $0x90] ss:$8 sps:$4 sm:$0xff]  }
  0xd7   :  { %1772 = vmatpush1.bf16.msra.mxu0 %v3425_v52  ;;  %1936 = vmatpush1.bf16.msra.mxu1 %v3428_v53  ;;  %v3523_v52 = vld [vmem:[%s4807_s3 + $0xa4] ss:$8 sps:$4 sm:$0xff]   ;;  %v3521_v53 = vld [vmem:[%s4807_s3 + $0xa0] ss:$8 sps:$4 sm:$0xff]  }
  0xd8   :  { %1773 = vmatprep.subr.bf16.mxu0 %v3433_v54  ;;  %1937 = vmatprep.subr.bf16.mxu1 %v3436_v55  ;;  %v3526_v54 = vld [vmem:[%s4807_s3 + $0xb4] ss:$8 sps:$4 sm:$0xff]   ;;  %v3524_v55 = vld [vmem:[%s4807_s3 + $0xb0] ss:$8 sps:$4 sm:$0xff]  }
  0xdb   :  { %1774 = vmatpush1.bf16.msra.mxu0 %v3431_v56  ;;  %1938 = vmatpush1.bf16.msra.mxu1 %v3434_v57  ;;  %v3529_v56 = vld [vmem:[%s4807_s3 + $0xc4] ss:$8 sps:$4 sm:$0xff]   ;;  %v3527_v57 = vld [vmem:[%s4807_s3 + $0xc0] ss:$8 sps:$4 sm:$0xff]  }
  0xdc   :  { %1775 = vmatprep.subr.bf16.mxu0 %v3439_v58  ;;  %1939 = vmatprep.subr.bf16.mxu1 %v3442_v59  ;;  %v3532_v58 = vld [vmem:[%s4807_s3 + $0xd4] ss:$8 sps:$4 sm:$0xff]   ;;  %v3530_v59 = vld [vmem:[%s4807_s3 + $0xd0] ss:$8 sps:$4 sm:$0xff]  }
  0xdf   :  { %1776 = vmatpush1.bf16.msra.mxu0 %v3437_v60  ;;  %1940 = vmatpush1.bf16.msra.mxu1 %v3440_v61  ;;  %v3535_v60 = vld [vmem:[%s4807_s3 + $0xe4] ss:$8 sps:$4 sm:$0xff]   ;;  %v3533_v61 = vld [vmem:[%s4807_s3 + $0xe0] ss:$8 sps:$4 sm:$0xff]  }
  0xe0   :  { %1777 = vmatprep.subr.bf16.mxu0 %v3445_v62  ;;  %1941 = vmatprep.subr.bf16.mxu1 %v3448_v63  ;;  %v3538_v62 = vld [vmem:[%s4807_s3 + $0xf4] ss:$8 sps:$4 sm:$0xff]   ;;  %v3536_v63 = vld [vmem:[%s4807_s3 + $0xf0] ss:$8 sps:$4 sm:$0xff]  }
  0xe3   :  { %1778 = vmatpush1.bf16.msra.mxu0 %v3443_v0  ;;  %1942 = vmatpush1.bf16.msra.mxu1 %v3446_v1  ;;  %v3541_v0 = vld [vmem:[%s4807_s3 + $0x104] ss:$8 sps:$4 sm:$0xff]   ;;  %v3587_v1 = vld [vmem:[%s4808_s5] ss:$8 sps:$4 sm:$0xff]  }
  0xe4   :  { %1779 = vmatprep.subr.bf16.mxu0 %v3451_v2  ;;  %1943 = vmatprep.subr.bf16.mxu1 %v3454_v3  ;;  %v3589_v2 = vld [vmem:[%s4808_s5 + $0x4] ss:$8 sps:$4 sm:$0xff]   ;;  %v3592_v3 = vld [vmem:[%s4808_s5 + $0x14] ss:$8 sps:$4 sm:$0xff]  }
  0xe7   :  { %1780 = vmatpush1.bf16.msra.mxu0 %v3449_v4  ;;  %1944 = vmatpush1.bf16.msra.mxu1 %v3452_v5  ;;  %v3590_v4 = vld [vmem:[%s4808_s5 + $0x10] ss:$8 sps:$4 sm:$0xff]   ;;  %v3595_v5 = vld [vmem:[%s4808_s5 + $0x24] ss:$8 sps:$4 sm:$0xff]  }
  0xe8   :  { %1781 = vmatprep.subr.bf16.mxu0 %v3457_v6  ;;  %1945 = vmatprep.subr.bf16.mxu1 %v3460_v7  ;;  %v3593_v6 = vld [vmem:[%s4808_s5 + $0x20] ss:$8 sps:$4 sm:$0xff]   ;;  %v3598_v7 = vld [vmem:[%s4808_s5 + $0x34] ss:$8 sps:$4 sm:$0xff]  }
  0xeb   :  { %1782 = vmatpush1.bf16.msra.mxu0 %v3455_v8  ;;  %1946 = vmatpush1.bf16.msra.mxu1 %v3458_v10  ;;  %v3596_v8 = vld [vmem:[%s4808_s5 + $0x30] ss:$8 sps:$4 sm:$0xff]   ;;  %v3601_v10 = vld [vmem:[%s4808_s5 + $0x44] ss:$8 sps:$4 sm:$0xff]  }
  0xec   :  { %1783 = vmatprep.subr.bf16.mxu0 %v3463_v11  ;;  %1947 = vmatprep.subr.bf16.mxu1 %v3466_v13  ;;  %v3599_v11 = vld [vmem:[%s4808_s5 + $0x40] ss:$8 sps:$4 sm:$0xff]   ;;  %v3604_v13 = vld [vmem:[%s4808_s5 + $0x54] ss:$8 sps:$4 sm:$0xff]  }
  0xef   :  { %1784 = vmatpush1.bf16.msra.mxu0 %v3461_v14  ;;  %1948 = vmatpush1.bf16.msra.mxu1 %v3464_v15  ;;  %v3602_v14 = vld [vmem:[%s4808_s5 + $0x50] ss:$8 sps:$4 sm:$0xff]   ;;  %v3607_v15 = vld [vmem:[%s4808_s5 + $0x64] ss:$8 sps:$4 sm:$0xff]  }
  0xf0   :  { %1785 = vmatprep.subr.bf16.mxu0 %v3469_v16  ;;  %1949 = vmatprep.subr.bf16.mxu1 %v3472_v18  ;;  %v3605_v16 = vld [vmem:[%s4808_s5 + $0x60] ss:$8 sps:$4 sm:$0xff]   ;;  %v3610_v18 = vld [vmem:[%s4808_s5 + $0x74] ss:$8 sps:$4 sm:$0xff]  }
  0xf3   :  { %1786 = vmatpush1.bf16.msra.mxu0 %v3467_v19  ;;  %1950 = vmatpush1.bf16.msra.mxu1 %v3470_v20  ;;  %v3608_v19 = vld [vmem:[%s4808_s5 + $0x70] ss:$8 sps:$4 sm:$0xff]   ;;  %v3613_v20 = vld [vmem:[%s4808_s5 + $0x84] ss:$8 sps:$4 sm:$0xff]  }
  0xf4   :  { %1787 = vmatprep.subr.bf16.mxu0 %v3475_v21  ;;  %1951 = vmatprep.subr.bf16.mxu1 %v3478_v22  ;;  %v3611_v21 = vld [vmem:[%s4808_s5 + $0x80] ss:$8 sps:$4 sm:$0xff]   ;;  %v3616_v22 = vld [vmem:[%s4808_s5 + $0x94] ss:$8 sps:$4 sm:$0xff]  }
  0xf7   :  { %1788 = vmatpush1.bf16.msra.mxu0 %v3473_v23  ;;  %1952 = vmatpush1.bf16.msra.mxu1 %v3476_v24  ;;  %v3614_v23 = vld [vmem:[%s4808_s5 + $0x90] ss:$8 sps:$4 sm:$0xff]   ;;  %v3619_v24 = vld [vmem:[%s4808_s5 + $0xa4] ss:$8 sps:$4 sm:$0xff]  }
  0xf8   :  { %1789 = vmatprep.subr.bf16.mxu0 %v3481_v12  ;;  %1953 = vmatprep.subr.bf16.mxu1 %v3484_v26  ;;  %v3617_v12 = vld [vmem:[%s4808_s5 + $0xa0] ss:$8 sps:$4 sm:$0xff]   ;;  %v3622_v26 = vld [vmem:[%s4808_s5 + $0xb4] ss:$8 sps:$4 sm:$0xff]  }
  0xfb   :  { %1790 = vmatpush1.bf16.msra.mxu0 %v3479_v9  ;;  %1954 = vmatpush1.bf16.msra.mxu1 %v3482_v27  ;;  %v3620_v9 = vld [vmem:[%s4808_s5 + $0xb0] ss:$8 sps:$4 sm:$0xff]   ;;  %v3625_v27 = vld [vmem:[%s4808_s5 + $0xc4] ss:$8 sps:$4 sm:$0xff]  }
  0xfc   :  { %1791 = vmatprep.subr.bf16.mxu0 %v3487_v49  ;;  %1955 = vmatprep.subr.bf16.mxu1 %v3490_v28  ;;  %v4657_v49 = vsub.s32 0, %v3793_v43  ;;  %v4662_v28 = vld [vmem:[%s4809_s2] sm:$0xf] }
  0xff   :  { %1792 = vmatpush1.bf16.msra.mxu0 %v3485_v29  ;;  %1956 = vmatpush1.bf16.msra.mxu1 %v3488_v30  ;;  %v4665_v29 = vsub.s32 1, %v3793_v43  ;;  %v352_v30 = vsub.s32 3, %v3793_v43 }
 0x100   :  { %2370 = vmatprep.subr.bf16.mxu0 %v3493_v31  ;;  %2660 = vmatprep.subr.bf16.mxu1 %v3589_v2  ;;  %v3623_v31 = vld [vmem:[%s4808_s5 + $0xc0] ss:$8 sps:$4 sm:$0xff]  }
 0x101   :  { %v3557_v2 = vld [vmem:[%s4807_s3 + $0x160] ss:$8 sps:$4 sm:$0xff]  }
 0x102   :  { %1794 = vmatmul.mubr.bf16.vlgmr.msra.gmra.mrb[0].mxu0 %v78_v32  ;;  %1958 = vmatmul.mubr.bf16.vlgmr.msra.gmra.mrb[0].mxu1 %v78_v32  ;;  %v3628_v32 = vld [vmem:[%s4808_s5 + $0xd4] ss:$8 sps:$4 sm:$0xff]  }
 0x103   :  { %2371 = vmatpush1.bf16.msra.mxu0 %v3491_v33  ;;  %2661 = vmatpush1.bf16.msra.mxu1 %v3587_v1  ;;  %v341_v33 = vrot.slane %v4662_v28, %v4657_v49  ;;  %v3559_v1 = vld [vmem:[%s4807_s3 + $0x164] ss:$8 sps:$4 sm:$0xff]  }
 0x104   :  { %2372 = vmatprep.subr.bf16.mxu0 %v3496_v34  ;;  %2662 = vmatprep.subr.bf16.mxu1 %v3592_v3  ;;  %v345_v34 = vrot.slane %v4662_v28, %v4665_v29  ;;  %v3562_v3 = vld [vmem:[%s4807_s3 + $0x174] ss:$8 sps:$4 sm:$0xff]  }
 0x107   :  { %2373 = vmatpush1.bf16.msra.mxu0 %v3494_v17  ;;  %2663 = vmatpush1.bf16.msra.mxu1 %v3590_v4  ;;  %v353_v17 = vrot.slane %v4662_v28, %v352_v30  ;;  %v3560_v4 = vld [vmem:[%s4807_s3 + $0x170] ss:$8 sps:$4 sm:$0xff]   ;;  %v3634_v30 = vld [vmem:[%s4808_s5 + $0xf4] ss:$8 sps:$4 sm:$0xff]  }
 0x108   :  { %2374 = vmatprep.subr.bf16.mxu0 %v3499_v25  ;;  %2664 = vmatprep.subr.bf16.mxu1 %v3595_v5  ;;  %v3626_v25 = vld [vmem:[%s4808_s5 + $0xd0] ss:$8 sps:$4 sm:$0xff]   ;;  %v3565_v5 = vld [vmem:[%s4807_s3 + $0x184] ss:$8 sps:$4 sm:$0xff]  }
 0x10b   :  { %2375 = vmatpush1.bf16.msra.mxu0 %v3497_v35  ;;  %2665 = vmatpush1.bf16.msra.mxu1 %v3593_v6  ;;  %v3563_v6 = vld [vmem:[%s4807_s3 + $0x180] ss:$8 sps:$4 sm:$0xff]  }
 0x10c   :  { %2376 = vmatprep.subr.bf16.mxu0 %v3502_v36  ;;  %2666 = vmatprep.subr.bf16.mxu1 %v3598_v7  ;;  %v3568_v7 = vld [vmem:[%s4807_s3 + $0x194] ss:$8 sps:$4 sm:$0xff]  }
 0x10f   :  { %2377 = vmatpush1.bf16.msra.mxu0 %v3500_v37  ;;  %2667 = vmatpush1.bf16.msra.mxu1 %v3596_v8  ;;  %v3566_v8 = vld [vmem:[%s4807_s3 + $0x190] ss:$8 sps:$4 sm:$0xff]  }
 0x110   :  { %2378 = vmatprep.subr.bf16.mxu0 %v3505_v38  ;;  %2668 = vmatprep.subr.bf16.mxu1 %v3601_v10  ;;  %v3571_v10 = vld [vmem:[%s4807_s3 + $0x1a4] ss:$8 sps:$4 sm:$0xff]  }
 0x113   :  { %2379 = vmatpush1.bf16.msra.mxu0 %v3503_v39  ;;  %2669 = vmatpush1.bf16.msra.mxu1 %v3599_v11  ;;  %v3569_v11 = vld [vmem:[%s4807_s3 + $0x1a0] ss:$8 sps:$4 sm:$0xff]  }
 0x114   :  { %2380 = vmatprep.subr.bf16.mxu0 %v3508_v40  ;;  %2670 = vmatprep.subr.bf16.mxu1 %v3604_v13  ;;  %v3574_v13 = vld [vmem:[%s4807_s3 + $0x1b4] ss:$8 sps:$4 sm:$0xff]  }
 0x117   :  { %2381 = vmatpush1.bf16.msra.mxu0 %v3506_v41  ;;  %2671 = vmatpush1.bf16.msra.mxu1 %v3602_v14  ;;  %v3572_v14 = vld [vmem:[%s4807_s3 + $0x1b0] ss:$8 sps:$4 sm:$0xff]  }
 0x118   :  { %2382 = vmatprep.subr.bf16.mxu0 %v3511_v42  ;;  %2672 = vmatprep.subr.bf16.mxu1 %v3607_v15  ;;  %v3577_v15 = vld [vmem:[%s4807_s3 + $0x1c4] ss:$8 sps:$4 sm:$0xff]  }
 0x11b   :  { %2383 = vmatpush1.bf16.msra.mxu0 %v3509_v44  ;;  %2673 = vmatpush1.bf16.msra.mxu1 %v3605_v16  ;;  %v3575_v16 = vld [vmem:[%s4807_s3 + $0x1c0] ss:$8 sps:$4 sm:$0xff]  }
 0x11c   :  { %2384 = vmatprep.subr.bf16.mxu0 %v3514_v45  ;;  %2674 = vmatprep.subr.bf16.mxu1 %v3610_v18  ;;  %v348_v18 = vsub.s32 2, %v3793_v43  ;;  %v3581_v43 = vld [vmem:[%s4807_s3 + $0x1e0] ss:$8 sps:$4 sm:$0xff]  }
 0x11f   :  { %2385 = vmatpush1.bf16.msra.mxu0 %v3512_v46  ;;  %2675 = vmatpush1.bf16.msra.mxu1 %v3608_v19  ;;  %v3580_v19 = vld [vmem:[%s4807_s3 + $0x1d4] ss:$8 sps:$4 sm:$0xff]  }
 0x120   :  { %2386 = vmatprep.subr.bf16.mxu0 %v3517_v47  ;;  %2676 = vmatprep.subr.bf16.mxu1 %v3613_v20  ;;  %v3578_v20 = vld [vmem:[%s4807_s3 + $0x1d0] ss:$8 sps:$4 sm:$0xff]  }
 0x123   :  { %2387 = vmatpush1.bf16.msra.mxu0 %v3515_v48  ;;  %2677 = vmatpush1.bf16.msra.mxu1 %v3611_v21  ;;  %v349_v21 = vrot.slane %v4662_v28, %v348_v18  ;;  %v3629_v28 = vld [vmem:[%s4808_s5 + $0xe0] ss:$8 sps:$4 sm:$0xff]  }
 0x124   :  { %2388 = vmatprep.subr.bf16.mxu0 %v3520_v50  ;;  %2678 = vmatprep.subr.bf16.mxu1 %v3616_v22  ;;  %v3583_v22 = vld [vmem:[%s4807_s3 + $0x1e4] ss:$8 sps:$4 sm:$0xff]  }
 0x127   :  { %2389 = vmatpush1.bf16.msra.mxu0 %v3518_v51  ;;  %2679 = vmatpush1.bf16.msra.mxu1 %v3614_v23 }
 0x128   :  { %2390 = vmatprep.subr.bf16.mxu0 %v3523_v52  ;;  %2680 = vmatprep.subr.bf16.mxu1 %v3619_v24  ;;  %v3539_v52 = vld [vmem:[%s4807_s3 + $0x100] ss:$8 sps:$4 sm:$0xff]   ;;  %v3586_v24 = vld [vmem:[%s4807_s3 + $0x1f4] ss:$8 sps:$4 sm:$0xff]  }
 0x12b   :  { %2391 = vmatpush1.bf16.msra.mxu0 %v3521_v53  ;;  %2681 = vmatpush1.bf16.msra.mxu1 %v3617_v12  ;;  %v3584_v12 = vld [vmem:[%s4807_s3 + $0x1f0] ss:$8 sps:$4 sm:$0xff]  }
 0x12c   :  { %2392 = vmatprep.subr.bf16.mxu0 %v3526_v54  ;;  %2682 = vmatprep.subr.bf16.mxu1 %v3622_v26  ;;  %v3544_v54 = vld [vmem:[%s4807_s3 + $0x114] ss:$8 sps:$4 sm:$0xff]  }
 0x12f   :  { %2393 = vmatpush1.bf16.msra.mxu0 %v3524_v55  ;;  %2683 = vmatpush1.bf16.msra.mxu1 %v3620_v9 }
 0x130   :  { %2394 = vmatprep.subr.bf16.mxu0 %v3529_v56  ;;  %2684 = vmatprep.subr.bf16.mxu1 %v3625_v27  ;;  %v3542_v56 = vld [vmem:[%s4807_s3 + $0x110] ss:$8 sps:$4 sm:$0xff]   ;;  %v3631_v27 = vld [vmem:[%s4808_s5 + $0xe4] ss:$8 sps:$4 sm:$0xff]  }
 0x133   :  { %2395 = vmatpush1.bf16.msra.mxu0 %v3527_v57  ;;  %2685 = vmatpush1.bf16.msra.mxu1 %v3623_v31  ;;  %v3547_v57 = vld [vmem:[%s4807_s3 + $0x124] ss:$8 sps:$4 sm:$0xff]   ;;  %v3632_v31 = vld [vmem:[%s4808_s5 + $0xf0] ss:$8 sps:$4 sm:$0xff]  }
 0x134   :  { %2396 = vmatprep.subr.bf16.mxu0 %v3532_v58  ;;  %2686 = vmatprep.subr.bf16.mxu1 %v3628_v32  ;;  %v3545_v58 = vld [vmem:[%s4807_s3 + $0x120] ss:$8 sps:$4 sm:$0xff]  }
 0x135   :  { %v2038_v32 = vld [vmem:[%s4810_s4] sm:$0x3] }
 0x137   :  { %2397 = vmatpush1.bf16.msra.mxu0 %v3530_v59  ;;  %2687 = vmatpush1.bf16.msra.mxu1 %v3626_v25  ;;  %v3550_v59 = vld [vmem:[%s4807_s3 + $0x134] ss:$8 sps:$4 sm:$0xff]  }
 0x138   :  { %2398 = vmatprep.subr.bf16.mxu0 %v3535_v60  ;;  %v3548_v60 = vld [vmem:[%s4807_s3 + $0x130] ss:$8 sps:$4 sm:$0xff]   ;;  %2688 = vmatprep.subr.bf16.mxu1 %v3631_v27 }
 0x13b   :  { %2399 = vmatpush1.bf16.msra.mxu0 %v3533_v61  ;;  %v3553_v61 = vld [vmem:[%s4807_s3 + $0x144] ss:$8 sps:$4 sm:$0xff]   ;;  %2689 = vmatpush1.bf16.msra.mxu1 %v3629_v28 }
 0x13c   :  { %2400 = vmatprep.subr.bf16.mxu0 %v3538_v62  ;;  %v3551_v62 = vld [vmem:[%s4807_s3 + $0x140] ss:$8 sps:$4 sm:$0xff]   ;;  %2690 = vmatprep.subr.bf16.mxu1 %v3634_v30 }
 0x13f   :  { %2401 = vmatpush1.bf16.msra.mxu0 %v3536_v63  ;;  %v3556_v63 = vld [vmem:[%s4807_s3 + $0x154] ss:$8 sps:$4 sm:$0xff]   ;;  %2691 = vmatpush1.bf16.msra.mxu1 %v3632_v31 }
 0x140   :  { %2411 = vmatprep.subr.bf16.mxu0 %v3541_v0  ;;  %v3554_v0 = vld [vmem:[%s4807_s3 + $0x150] ss:$8 sps:$4 sm:$0xff]  }
 0x1d5   :  { %v1795_v35 = vpop.f32.mrb[0].mxu0  ;;  %v4682_v36 = vpop.f32.mrb[0].mxu1 }
 0x1d6   :  { %v3070_v37 = vadd.f32 %v1795_v35, %v341_v33  ;;  %v1797_v38 = vpop.f32.mrb[1].mxu0  ;;  %v1961_v39 = vpop.f32.mrb[1].mxu1  ;;  %v3072_v23 = vadd.f32 %v4682_v36, %v349_v21  ;;  %v2043_v33 = vrot.slane %v2038_v32, %v4657_v49 }
 0x1d7   :  { %v3071_v40 = vadd.f32 %v1797_v38, %v345_v34  ;;  %v3073_v41 = vadd.f32 %v1961_v39, %v353_v17  ;;  %v1799_v42 = vpop.f32.mrb[2].mxu0  ;;  %v1963_v44 = vpop.f32.mrb[2].mxu1  ;;  %v2047_v34 = vrot.slane %v2038_v32, %v4665_v29 }
 0x1d8   :  { %v1966_v45 = vmax.f32 %v3070_v37, 0.0  ;;  %v1800_v46 = vpop.f32.mrb[3].mxu0  ;;  %v1964_v47 = vpop.f32.mrb[3].mxu1  ;;  %v1968_v26 = vmax.f32 %v3072_v23, 0.0  ;;  %v2488_v44 = vld [vmem:[%s4811_s6] sm:$0x3] }
 0x1d9   :  { %v1967_v48 = vmax.f32 %v3071_v40, 0.0  ;;  %v1969_v50 = vmax.f32 %v3073_v41, 0.0  ;;  %v2497_v46 = vrot.slane %v2488_v44, %v4665_v29 }
 0x1da   :  { %v1970_v53 = vpack.c.bf16 %v1966_v45, %v1966_v45  ;;  %v1972_v9 = vpack.c.bf16 %v1968_v26, %v1968_v26  ;;  %v2493_v45 = vrot.slane %v2488_v44, %v4657_v49 }
 0x1db   :  { %v1971_v51 = vpack.c.bf16 %v1967_v48, %v1967_v48  ;;  %v1973_v55 = vpack.c.bf16 %v1969_v50, %v1969_v50 }
 0x1dd   :  { %2402 = vmatprep.mubr.bf16.mxu0 %v1971_v51 }
 0x1de   :  { %2403 = vmatmul.mubr.bf16.vlgmr.msra.gmra.mrb[4].mxu0 %v1970_v53 }
 0x1df   :  { %2412 = vmatpush1.bf16.msra.mxu0 %v3539_v52  ;;  %2443 = vmatprep.mubr.bf16.mxu0 %v1973_v55 }
 0x1e0   :  { %2413 = vmatprep.subr.bf16.mxu0 %v3544_v54 }
 0x1e3   :  { %2414 = vmatpush1.bf16.msra.mxu0 %v3542_v56 }
 0x1e4   :  { %2415 = vmatprep.subr.bf16.mxu0 %v3547_v57 }
 0x1e7   :  { %2416 = vmatpush1.bf16.msra.mxu0 %v3545_v58 }
 0x1e8   :  { %2417 = vmatprep.subr.bf16.mxu0 %v3550_v59 }
 0x1eb   :  { %2418 = vmatpush1.bf16.msra.mxu0 %v3548_v60 }
 0x1ec   :  { %2419 = vmatprep.subr.bf16.mxu0 %v3553_v61 }
 0x1ef   :  { %2420 = vmatpush1.bf16.msra.mxu0 %v3551_v62 }
 0x1f0   :  { %2421 = vmatprep.subr.bf16.mxu0 %v3556_v63 }
 0x1f3   :  { %2422 = vmatpush1.bf16.msra.mxu0 %v3554_v0 }
 0x1f4   :  { %2423 = vmatprep.subr.bf16.mxu0 %v3559_v1 }
 0x1f7   :  { %2424 = vmatpush1.bf16.msra.mxu0 %v3557_v2 }
 0x1f8   :  { %2425 = vmatprep.subr.bf16.mxu0 %v3562_v3 }
 0x1fb   :  { %2426 = vmatpush1.bf16.msra.mxu0 %v3560_v4 }
 0x1fc   :  { %2427 = vmatprep.subr.bf16.mxu0 %v3565_v5 }
 0x1ff   :  { %2428 = vmatpush1.bf16.msra.mxu0 %v3563_v6 }
 0x200   :  { %2429 = vmatprep.subr.bf16.mxu0 %v3568_v7 }
 0x203   :  { %2430 = vmatpush1.bf16.msra.mxu0 %v3566_v8 }
 0x204   :  { %2431 = vmatprep.subr.bf16.mxu0 %v3571_v10 }
 0x207   :  { %2432 = vmatpush1.bf16.msra.mxu0 %v3569_v11 }
 0x208   :  { %2433 = vmatprep.subr.bf16.mxu0 %v3574_v13 }
 0x20b   :  { %2434 = vmatpush1.bf16.msra.mxu0 %v3572_v14 }
 0x20c   :  { %2435 = vmatprep.subr.bf16.mxu0 %v3577_v15 }
 0x20f   :  { %2436 = vmatpush1.bf16.msra.mxu0 %v3575_v16 }
 0x210   :  { %2437 = vmatprep.subr.bf16.mxu0 %v3580_v19 }
 0x213   :  { %2438 = vmatpush1.bf16.msra.mxu0 %v3578_v20 }
 0x214   :  { %2439 = vmatprep.subr.bf16.mxu0 %v3583_v22 }
 0x217   :  { %2440 = vmatpush1.bf16.msra.mxu0 %v3581_v43 }
 0x218   :  { %2441 = vmatprep.subr.bf16.mxu0 %v3586_v24 }
 0x21b   :  { %2442 = vmatpush1.bf16.msra.mxu0 %v3584_v12 }
 0x21e   :  { %2444 = vmatmul.mubr.bf16.vlgmr.msra.gmra.mrb[4].mxu0 %v1972_v9 }
 0x2f1   :  { %v2445_v17 = vpop.f32.mrb[4].mxu0 }
 0x2f2   :  { %v3074_v25 = vadd.f32 %v2445_v17, %v2043_v33  ;;  %v2447_v35 = vpop.f32.mrb[5].mxu0 }
 0x2f3   :  { %v3075_v36 = vadd.f32 %v2447_v35, %v2047_v34  ;;  %v2449_v37 = vpop.f32.mrb[6].mxu0 }
 0x2f4   :  { %v2452_v38 = vmax.f32 %v3074_v25, 0.0  ;;  %v2450_v39 = vpop.f32.mrb[7].mxu0 }
 0x2f5   :  { %v2453_v40 = vmax.f32 %v3075_v36, 0.0 }
 0x2f6   :  { %v2454_v42 = vpack.c.bf16 %v2452_v38, %v2452_v38 }
 0x2f7   :  { %v2455_v41 = vpack.c.bf16 %v2453_v40, %v2453_v40 }
 0x2f9   :  { %2692 = vmatprep.mubr.bf16.mxu1 %v2455_v41 }
 0x2fa   :  { %2693 = vmatmul.mubr.bf16.vlgmr.msra.gmra.mrb[4].mxu1 %v2454_v42 }
 0x3cd   :  { %v2694_v47 = vpop.f32.mrb[4].mxu1 }
 0x3ce   :  { %v2695_v48 = vadd.f32 %v2694_v47, %v2493_v45  ;;  %v2696_v50 = vpop.f32.mrb[5].mxu1 }
 0x3cf   :  { %v2697_v51 = vadd.f32 %v2696_v50, %v2497_v46  ;;  %v2698_v52 = vpop.f32.mrb[6].mxu1 }
 0x3d0   :  { %v2699_v53 = vpop.f32.mrb[7].mxu1 }
 0x3d1   :  { %v2703_v54 = vcombine.low %v2695_v48, %v2697_v51 }
 0x3d3   :  { %3069 = vst.sshfl [vmem:[%s4812_s7] sm:$0x33 pattern:$0x76325410] %v2703_v54 }

</bundles_post_ra>
